<compile_context>
chip_gen: v7x
topology: tpu7x:2x2x1
jax: 0.10.0
libtpu: 0.0.40
codegen_flags: <defaults>
</compile_context>

<pallas_src>
import functools

import jax
import jax.numpy as jnp
from jax.experimental import pallas as pl
from jax.experimental.pallas import tpu as pltpu


def clam_path_kernel(x_ref, w1_ref, b1_ref, wag_ref, bag_ref, wc_ref,
                     wcls_ref, bcls_ref,
                     scores_ref, hz_ref, s_ref, logit_ref, m_ref,
                     m_acc, max_acc, sum_acc, *, n_valid):
    pid = pl.program_id(0)
    tile_n = x_ref.shape[0]
    d = w1_ref.shape[1]

    # ---- init online-softmax accumulators on the first patch tile ----
    @pl.when(pid == 0)
    def _init():
        max_acc[...] = jnp.full(max_acc.shape, -1e30, max_acc.dtype)
        sum_acc[...] = jnp.zeros(sum_acc.shape, sum_acc.dtype)
        m_acc[...] = jnp.zeros(m_acc.shape, m_acc.dtype)

    # ---- PathologyNet: Linear + ReLU (bf16 MXU operands, f32 accumulate) ----
    x = x_ref[...]                                                        # (T, F) bf16
    h = jnp.dot(x, w1_ref[...], preferred_element_type=jnp.float32) + b1_ref[...]
    h = jnp.maximum(h, 0.0)                                               # (T, D) f32

    # ---- Attn_Net_Gated: fused [Wa | Wg] matmul, then tanh / sigmoid ----
    ag = jnp.dot(h.astype(jnp.bfloat16), wag_ref[...],
                 preferred_element_type=jnp.float32) + bag_ref[...]       # (T, 2D) f32
    a = jnp.tanh(ag[:, :d])
    g = jax.nn.sigmoid(ag[:, d:])

    # ---- attention scores, produced lane-dense as a (1, T) row ----
    # scores = wc · (a*g)^T   (contract D with D); bias bc is softmax-invariant and
    # is re-added in the wrapper for the raw-score output.
    scores = jax.lax.dot_general(
        wc_ref[...], a * g,
        dimension_numbers=(((1,), (1,)), ((), ())),
        preferred_element_type=jnp.float32)                               # (1, T)

    # mask padded patch rows (global patch index >= n_valid)
    gidx = pid * tile_n + jax.lax.broadcasted_iota(jnp.int32, (1, tile_n), 1)
    scores = jnp.where(gidx < n_valid, scores, -1e30)
    scores_ref[...] = scores

    # ---- online softmax + MIL pooling (rescaled running accumulators) ----
    tile_max = jnp.max(scores, axis=1, keepdims=True)                     # (1, 1)
    m_new = jnp.maximum(max_acc[...], tile_max)
    alpha = jnp.exp(max_acc[...] - m_new)
    p = jnp.exp(scores - m_new)                                           # (1, T)
    sum_acc[...] = alpha * sum_acc[...] + jnp.sum(p, axis=1, keepdims=True)
    m_acc[...] = alpha * m_acc[...] + jnp.dot(p, h, preferred_element_type=jnp.float32)
    max_acc[...] = m_new

    # ---- finalize on the last patch tile: pooled M + MTNet survival head ----
    @pl.when(pid == pl.num_programs(0) - 1)
    def _finalize():
        inv = pl.reciprocal(sum_acc[...], approx=True)                    # (1, 1)
        M = m_acc[...] * inv                                              # (1, D)
        m_ref[...] = M
        logits = jnp.dot(M, wcls_ref[...], preferred_element_type=jnp.float32) + bcls_ref[...]
        logit_ref[...] = logits                                           # (1, nb)
        hz_ref[...] = jax.nn.sigmoid(logits)
        # S = cumprod(1 - sigmoid(logits)) = exp(cumsum(-softplus(logits)))  (stable)
        nb = logits.shape[1]
        row = jax.lax.broadcasted_iota(jnp.int32, (nb, nb), 0)
        col = jax.lax.broadcasted_iota(jnp.int32, (nb, nb), 1)
        tri = (row <= col).astype(jnp.float32)
        s_ref[...] = jnp.exp(jnp.dot(-jax.nn.softplus(logits), tri,
                                     preferred_element_type=jnp.float32))


def clam_path_forward(patho, params, tile_n=1024):
    """Runs the fused CLAM_path forward. Returns (hazards, S, Y_hat, logits, M, A)."""
    (w1, b1, wa, ba, wg, bg, wc, bc, wcls, bcls) = params
    N, f_in = patho.shape
    D = w1.shape[1]
    nb = wcls.shape[1]

    # pad patch axis up to a multiple of the tile (padded rows are masked in-kernel)
    num_tiles = pl.cdiv(N, tile_n)
    n_pad = num_tiles * tile_n
    if n_pad != N:
        patho = jnp.pad(patho, ((0, n_pad - N), (0, 0)))

    # fuse the gated-attention weights; cast MXU operands to bf16 (f32 accumulate in-kernel)
    x_bf = patho.astype(jnp.bfloat16)
    w1_bf = w1.astype(jnp.bfloat16)
    wag = jnp.concatenate([wa, wg], axis=1).astype(jnp.bfloat16)          # (D, 2D)
    bag = jnp.concatenate([ba, bg], axis=1)                               # (1, 2D) f32
    wc_row = wc.reshape(1, D)                                             # (1, D)  f32

    kernel = functools.partial(clam_path_kernel, n_valid=N)

    scores, hz, S, logits, M = pl.pallas_call(
        kernel,
        out_shape=(
            jax.ShapeDtypeStruct((1, n_pad), jnp.float32),   # raw attention scores (lane-dense row)
            jax.ShapeDtypeStruct((1, nb), jnp.float32),      # hazards
            jax.ShapeDtypeStruct((1, nb), jnp.float32),      # S (survival)
            jax.ShapeDtypeStruct((1, nb), jnp.float32),      # logits
            jax.ShapeDtypeStruct((1, D), jnp.float32),       # pooled M
        ),
        grid_spec=pltpu.PrefetchScalarGridSpec(
            num_scalar_prefetch=0,
            grid=(num_tiles,),
            in_specs=[
                pl.BlockSpec((tile_n, f_in), lambda i: (i, 0)),   # streamed patch features
                pl.BlockSpec((f_in, D), lambda i: (0, 0)),        # W1 (resident)
                pl.BlockSpec((1, D), lambda i: (0, 0)),           # b1
                pl.BlockSpec((D, 2 * D), lambda i: (0, 0)),       # [Wa | Wg]
                pl.BlockSpec((1, 2 * D), lambda i: (0, 0)),       # [ba | bg]
                pl.BlockSpec((1, D), lambda i: (0, 0)),           # wc (row form)
                pl.BlockSpec((D, nb), lambda i: (0, 0)),          # Wcls
                pl.BlockSpec((1, nb), lambda i: (0, 0)),          # bcls
            ],
            out_specs=(
                pl.BlockSpec((1, tile_n), lambda i: (0, i)),      # scores, lane-dense per tile
                pl.BlockSpec((1, nb), lambda i: (0, 0)),
                pl.BlockSpec((1, nb), lambda i: (0, 0)),
                pl.BlockSpec((1, nb), lambda i: (0, 0)),
                pl.BlockSpec((1, D), lambda i: (0, 0)),
            ),
            scratch_shapes=[
                pltpu.VMEM((1, D), jnp.float32),    # m_acc (unnormalized pooled M)
                pltpu.VMEM((1, 1), jnp.float32),    # running max
                pltpu.VMEM((1, 1), jnp.float32),    # running sum
            ],
        ),
        compiler_params=pltpu.CompilerParams(
            dimension_semantics=("arbitrary",),        # reduction over the patch axis
            vmem_limit_bytes=32 * 1024 * 1024,         # safe on v5e/v6e/v7x
        ),
    )(x_bf, w1_bf, b1, wag, bag, wc_row, wcls, bcls)

    # A = softmax(A_raw^T, dim=1); bc is a constant offset (softmax-invariant) re-added here.
    A_raw = scores[:, :N] + bc.reshape(1, 1)
    A = jax.nn.softmax(A_raw, axis=1)                                     # (1, N)
    Y_hat = jnp.argmax(logits, axis=1, keepdims=True)                     # topk(logits, 1)[1]
    return hz, S, Y_hat, logits, M, A


def init_params(key, f_in, d, n_bins):
    ks = jax.random.split(key, 10)

    def lin(k, fan_in, fan_out):
        lim = 1.0 / jnp.sqrt(fan_in)
        kw, kb = jax.random.split(k)
        w = jax.random.uniform(kw, (fan_in, fan_out), jnp.float32, -lim, lim)
        b = jax.random.uniform(kb, (1, fan_out), jnp.float32, -lim, lim)
        return w, b

    w1, b1 = lin(ks[0], f_in, d)        # PathologyNet
    wa, ba = lin(ks[1], d, d)           # Attn_Net_Gated tanh branch
    wg, bg = lin(ks[2], d, d)           # Attn_Net_Gated sigmoid branch
    wc, bc = lin(ks[3], d, 1)           # attention score projection
    wcls, bcls = lin(ks[4], d, n_bins)  # MTNet survival classifier
    return (w1, b1, wa, ba, wg, bg, wc, bc, wcls, bcls)


if __name__ == "__main__":
    key = jax.random.PRNGKey(0)
    k_data, k_param = jax.random.split(key)

    N_PATCHES = 500       # bag size (not a multiple of the tile -> exercises masking)
    F_IN = 128            # raw patch feature dim
    D = 128               # embedding_coattn_dim
    N_BINS = 4            # survival time bins in MTNet
    TILE_N = 128          # patch tile (grid of 4 steps at these demo sizes)

    patho = jax.random.normal(k_data, (N_PATCHES, F_IN), jnp.float32)

    # clinical = [c, event_time, label]  (pass-through tensors in the forward)
    c = jnp.array([1], jnp.int32)
    event_time = jnp.array([12.5], jnp.float32)
    label = jnp.array([2], jnp.int32)
    data = {'pathology': [patho], 'clinical': [c, event_time, label]}

    params = init_params(k_param, F_IN, D, N_BINS)

    hazards, S, Y_hat, logits, M, A = clam_path_forward(
        data['pathology'][0], params, tile_n=TILE_N)
    out = (hazards, S, Y_hat, data['clinical'][0], data['clinical'][2], data['clinical'][1])
    jax.block_until_ready(out)

    # light sanity checks
    assert hazards.shape == (1, N_BINS) and S.shape == (1, N_BINS)
    assert Y_hat.shape == (1, 1) and M.shape == (1, D) and A.shape == (1, N_PATCHES)
    assert bool(jnp.all(jnp.isfinite(hazards))) and bool(jnp.all(jnp.isfinite(S)))
    assert bool(jnp.all(jnp.isfinite(M))) and bool(jnp.all(jnp.isfinite(A)))
    assert abs(float(jnp.sum(A)) - 1.0) < 1e-4
    # S = cumprod(1 - hazards) must be in (0, 1] and non-increasing
    assert bool(jnp.all(S > 0.0)) and bool(jnp.all(S <= 1.0))
    assert bool(jnp.all(S[0, 1:] <= S[0, :-1] + 1e-6))

    print("KERNEL_OK")
</pallas_src>

<mosaic_0001>
module attributes {stable_mosaic.version = 11 : i64} {
  func.func @clam_path_kernel(%arg0: i32, %arg1: memref<128x128xbf16, #tpu.memory_space<vmem>>, %arg2: memref<128x128xbf16, #tpu.memory_space<vmem>>, %arg3: memref<1x128xf32, #tpu.memory_space<vmem>>, %arg4: memref<128x256xbf16, #tpu.memory_space<vmem>>, %arg5: memref<1x256xf32, #tpu.memory_space<vmem>>, %arg6: memref<1x128xf32, #tpu.memory_space<vmem>>, %arg7: memref<128x4xf32, #tpu.memory_space<vmem>>, %arg8: memref<1x4xf32, #tpu.memory_space<vmem>>, %arg9: memref<1x128xf32, #tpu.memory_space<vmem>>, %arg10: memref<1x4xf32, #tpu.memory_space<vmem>>, %arg11: memref<1x4xf32, #tpu.memory_space<vmem>>, %arg12: memref<1x4xf32, #tpu.memory_space<vmem>>, %arg13: memref<1x128xf32, #tpu.memory_space<vmem>>, %arg14: memref<1x128xf32, #tpu.memory_space<vmem>>, %arg15: memref<1x1xf32, #tpu.memory_space<vmem>>, %arg16: memref<1x1xf32, #tpu.memory_space<vmem>>) attributes {dimension_semantics = [#tpu.dimension_semantics<arbitrary>], iteration_bounds = array<i64: 4>, scalar_prefetch = 0 : i64, scratch_operands = 3 : i64, tpu.core_type = #tpu.core_type<tc>, window_params = [{transform_indices = @transform_0, window_bounds = array<i64: 128, 128>}, {pipeline_mode = #tpu.pipeline_mode<synchronous>, transform_indices = @transform_1, window_bounds = array<i64: 128, 128>}, {pipeline_mode = #tpu.pipeline_mode<synchronous>, transform_indices = @transform_2, window_bounds = array<i64: 1, 128>}, {pipeline_mode = #tpu.pipeline_mode<synchronous>, transform_indices = @transform_3, window_bounds = array<i64: 128, 256>}, {pipeline_mode = #tpu.pipeline_mode<synchronous>, transform_indices = @transform_4, window_bounds = array<i64: 1, 256>}, {pipeline_mode = #tpu.pipeline_mode<synchronous>, transform_indices = @transform_5, window_bounds = array<i64: 1, 128>}, {pipeline_mode = #tpu.pipeline_mode<synchronous>, transform_indices = @transform_6, window_bounds = array<i64: 128, 4>}, {pipeline_mode = #tpu.pipeline_mode<synchronous>, transform_indices = @transform_7, window_bounds = array<i64: 1, 4>}, {transform_indices = @transform_8, window_bounds = array<i64: 1, 128>}, {pipeline_mode = #tpu.pipeline_mode<synchronous>, transform_indices = @transform_9, window_bounds = array<i64: 1, 4>}, {pipeline_mode = #tpu.pipeline_mode<synchronous>, transform_indices = @transform_10, window_bounds = array<i64: 1, 4>}, {pipeline_mode = #tpu.pipeline_mode<synchronous>, transform_indices = @transform_11, window_bounds = array<i64: 1, 4>}, {pipeline_mode = #tpu.pipeline_mode<synchronous>, transform_indices = @transform_12, window_bounds = array<i64: 1, 128>}]} {
    %c0_i32 = arith.constant 0 : i32
    %0 = arith.cmpi eq, %arg0, %c0_i32 : i32
    %1 = arith.extui %0 : i1 to i32
    %c0_i32_0 = arith.constant 0 : i32
    %2 = arith.cmpi ne, %1, %c0_i32_0 : i32
    scf.if %2 {
      %cst_37 = arith.constant -1.000000e+30 : f32
      %63 = vector.broadcast %cst_37 : f32 to vector<1x1xf32>
      %c0_38 = arith.constant 0 : index
      %c0_39 = arith.constant 0 : index
      %64 = vector.load %arg15[%c0_38, %c0_39] : memref<1x1xf32, #tpu.memory_space<vmem>>, vector<1x1xf32>
      tpu.vector_store %arg15[%c0_38, %c0_39], %63 {strides = array<i32>} : memref<1x1xf32, #tpu.memory_space<vmem>>, vector<1x1xf32>,
      %cst_40 = arith.constant 0.000000e+00 : f32
      %65 = vector.broadcast %cst_40 : f32 to vector<1x1xf32>
      %c0_41 = arith.constant 0 : index
      %c0_42 = arith.constant 0 : index
      %66 = vector.load %arg16[%c0_41, %c0_42] : memref<1x1xf32, #tpu.memory_space<vmem>>, vector<1x1xf32>
      tpu.vector_store %arg16[%c0_41, %c0_42], %65 {strides = array<i32>} : memref<1x1xf32, #tpu.memory_space<vmem>>, vector<1x1xf32>,
      %cst_43 = arith.constant 0.000000e+00 : f32
      %67 = vector.broadcast %cst_43 : f32 to vector<1x128xf32>
      %c0_44 = arith.constant 0 : index
      %c0_45 = arith.constant 0 : index
      %68 = vector.load %arg14[%c0_44, %c0_45] : memref<1x128xf32, #tpu.memory_space<vmem>>, vector<1x128xf32>
      tpu.vector_store %arg14[%c0_44, %c0_45], %67 {strides = array<i32>} : memref<1x128xf32, #tpu.memory_space<vmem>>, vector<1x128xf32>,
    } else {
    }
    %c0 = arith.constant 0 : index
    %c0_1 = arith.constant 0 : index
    %3 = vector.load %arg1[%c0, %c0_1] : memref<128x128xbf16, #tpu.memory_space<vmem>>, vector<128x128xbf16>
    %c0_2 = arith.constant 0 : index
    %c0_3 = arith.constant 0 : index
    %4 = vector.load %arg2[%c0_2, %c0_3] : memref<128x128xbf16, #tpu.memory_space<vmem>>, vector<128x128xbf16>
    %cst = arith.constant dense<0.000000e+00> : vector<128x128xf32>
    %5 = tpu.matmul %3, %4, %cst {dimension_numbers = #tpu.dot_dimension_numbers<[1], [0], [0], [1], [0, 0, 1, 1], [], []>} : vector<128x128xbf16>, vector<128x128xbf16>, vector<128x128xf32> -> vector<128x128xf32>
    %c0_4 = arith.constant 0 : index
    %c0_5 = arith.constant 0 : index
    %6 = vector.load %arg3[%c0_4, %c0_5] : memref<1x128xf32, #tpu.memory_space<vmem>>, vector<1x128xf32>
    %7 = vector.broadcast %6 : vector<1x128xf32> to vector<128x128xf32>
    %8 = arith.addf %5, %7 : vector<128x128xf32>
    %cst_6 = arith.constant 0.000000e+00 : f32
    %9 = vector.broadcast %cst_6 : f32 to vector<128x128xf32>
    %10 = arith.maximumf %8, %9 : vector<128x128xf32>
    %11 = arith.truncf %10 : vector<128x128xf32> to vector<128x128xbf16>
    %c0_7 = arith.constant 0 : index
    %c0_8 = arith.constant 0 : index
    %12 = vector.load %arg4[%c0_7, %c0_8] : memref<128x256xbf16, #tpu.memory_space<vmem>>, vector<128x256xbf16>
    %cst_9 = arith.constant dense<0.000000e+00> : vector<128x256xf32>
    %13 = tpu.matmul %11, %12, %cst_9 {dimension_numbers = #tpu.dot_dimension_numbers<[1], [0], [0], [1], [0, 0, 1, 1], [], []>} : vector<128x128xbf16>, vector<128x256xbf16>, vector<128x256xf32> -> vector<128x256xf32>
    %c0_10 = arith.constant 0 : index
    %c0_11 = arith.constant 0 : index
    %14 = vector.load %arg5[%c0_10, %c0_11] : memref<1x256xf32, #tpu.memory_space<vmem>>, vector<1x256xf32>
    %15 = vector.broadcast %14 : vector<1x256xf32> to vector<128x256xf32>
    %16 = arith.addf %13, %15 : vector<128x256xf32>
    %17 = vector.extract_strided_slice %16 {offsets = [0, 0], sizes = [128, 128], strides = [1, 1]} : vector<128x256xf32> to vector<128x128xf32>
    %18 = math.tanh %17 : vector<128x128xf32>
    %19 = vector.extract_strided_slice %16 {offsets = [0, 128], sizes = [128, 128], strides = [1, 1]} : vector<128x256xf32> to vector<128x128xf32>
    %20 = arith.negf %19 : vector<128x128xf32>
    %21 = math.exp %20 : vector<128x128xf32>
    %cst_12 = arith.constant 1.000000e+00 : f32
    %22 = vector.broadcast %cst_12 : f32 to vector<128x128xf32>
    %23 = arith.addf %22, %21 : vector<128x128xf32>
    %24 = arith.divf %22, %23 : vector<128x128xf32>
    %c0_13 = arith.constant 0 : index
    %c0_14 = arith.constant 0 : index
    %25 = vector.load %arg6[%c0_13, %c0_14] : memref<1x128xf32, #tpu.memory_space<vmem>>, vector<1x128xf32>
    %26 = arith.mulf %18, %24 : vector<128x128xf32>
    %cst_15 = arith.constant dense<0.000000e+00> : vector<1x128xf32>
    %27 = tpu.matmul %25, %26, %cst_15 {dimension_numbers = #tpu.dot_dimension_numbers<[1], [1], [0], [0], [0, 0, 1, 0], [], []>} : vector<1x128xf32>, vector<128x128xf32>, vector<1x128xf32> -> vector<1x128xf32>
    %c128_i32 = arith.constant 128 : i32
    %28 = arith.muli %arg0, %c128_i32 : i32
    %29 = tpu.iota {dimensions = array<i32: 1>} : vector<1x128xi32>
    %30 = vector.broadcast %28 : i32 to vector<1x128xi32>
    %31 = arith.addi %30, %29 : vector<1x128xi32>
    %c500_i32 = arith.constant 500 : i32
    %32 = vector.broadcast %c500_i32 : i32 to vector<1x128xi32>
    %33 = arith.cmpi slt, %31, %32 : vector<1x128xi32>
    %cst_16 = arith.constant -1.000000e+30 : f32
    %34 = vector.broadcast %cst_16 : f32 to vector<1x128xf32>
    %35 = arith.select %33, %27, %34 : vector<1x128xi1>, vector<1x128xf32>
    %c0_17 = arith.constant 0 : index
    %c0_18 = arith.constant 0 : index
    %36 = vector.load %arg9[%c0_17, %c0_18] : memref<1x128xf32, #tpu.memory_space<vmem>>, vector<1x128xf32>
    tpu.vector_store %arg9[%c0_17, %c0_18], %35 {strides = array<i32>} : memref<1x128xf32, #tpu.memory_space<vmem>>, vector<1x128xf32>,
    %cst_19 = arith.constant dense<0xFF800000> : vector<1xf32>
    %37 = vector.multi_reduction <maximumf>, %35, %cst_19 [1] : vector<1x128xf32> to vector<1xf32>
    %38 = vector.shape_cast %37 : vector<1xf32> to vector<1x1xf32>
    %c0_20 = arith.constant 0 : index
    %c0_21 = arith.constant 0 : index
    %39 = vector.load %arg15[%c0_20, %c0_21] : memref<1x1xf32, #tpu.memory_space<vmem>>, vector<1x1xf32>
    %40 = arith.maximumf %39, %38 : vector<1x1xf32>
    %c0_22 = arith.constant 0 : index
    %c0_23 = arith.constant 0 : index
    %41 = vector.load %arg15[%c0_22, %c0_23] : memref<1x1xf32, #tpu.memory_space<vmem>>, vector<1x1xf32>
    %42 = arith.subf %41, %40 : vector<1x1xf32>
    %43 = math.exp %42 : vector<1x1xf32>
    %44 = vector.broadcast %40 : vector<1x1xf32> to vector<1x128xf32>
    %45 = arith.subf %35, %44 : vector<1x128xf32>
    %46 = math.exp %45 : vector<1x128xf32>
    %c0_24 = arith.constant 0 : index
    %c0_25 = arith.constant 0 : index
    %47 = vector.load %arg16[%c0_24, %c0_25] : memref<1x1xf32, #tpu.memory_space<vmem>>, vector<1x1xf32>
    %48 = arith.mulf %43, %47 : vector<1x1xf32>
    %cst_26 = arith.constant dense<0.000000e+00> : vector<1xf32>
    %49 = vector.multi_reduction <add>, %46, %cst_26 [1] : vector<1x128xf32> to vector<1xf32>
    %50 = vector.shape_cast %49 : vector<1xf32> to vector<1x1xf32>
    %51 = arith.addf %48, %50 : vector<1x1xf32>
    %c0_27 = arith.constant 0 : index
    %c0_28 = arith.constant 0 : index
    %52 = vector.load %arg16[%c0_27, %c0_28] : memref<1x1xf32, #tpu.memory_space<vmem>>, vector<1x1xf32>
    tpu.vector_store %arg16[%c0_27, %c0_28], %51 {strides = array<i32>} : memref<1x1xf32, #tpu.memory_space<vmem>>, vector<1x1xf32>,
    %c0_29 = arith.constant 0 : index
    %c0_30 = arith.constant 0 : index
    %53 = vector.load %arg14[%c0_29, %c0_30] : memref<1x128xf32, #tpu.memory_space<vmem>>, vector<1x128xf32>
    %54 = vector.broadcast %43 : vector<1x1xf32> to vector<1x128xf32>
    %55 = arith.mulf %54, %53 : vector<1x128xf32>
    %cst_31 = arith.constant dense<0.000000e+00> : vector<1x128xf32>
    %56 = tpu.matmul %46, %10, %cst_31 {dimension_numbers = #tpu.dot_dimension_numbers<[1], [0], [0], [1], [0, 0, 1, 1], [], []>} : vector<1x128xf32>, vector<128x128xf32>, vector<1x128xf32> -> vector<1x128xf32>
    %57 = arith.addf %55, %56 : vector<1x128xf32>
    %c0_32 = arith.constant 0 : index
    %c0_33 = arith.constant 0 : index
    %58 = vector.load %arg14[%c0_32, %c0_33] : memref<1x128xf32, #tpu.memory_space<vmem>>, vector<1x128xf32>
    tpu.vector_store %arg14[%c0_32, %c0_33], %57 {strides = array<i32>} : memref<1x128xf32, #tpu.memory_space<vmem>>, vector<1x128xf32>,
    %c0_34 = arith.constant 0 : index
    %c0_35 = arith.constant 0 : index
    %59 = vector.load %arg15[%c0_34, %c0_35] : memref<1x1xf32, #tpu.memory_space<vmem>>, vector<1x1xf32>
    tpu.vector_store %arg15[%c0_34, %c0_35], %40 {strides = array<i32>} : memref<1x1xf32, #tpu.memory_space<vmem>>, vector<1x1xf32>,
    %c3_i32 = arith.constant 3 : i32
    %60 = arith.cmpi eq, %arg0, %c3_i32 : i32
    %61 = arith.extui %60 : i1 to i32
    %c0_i32_36 = arith.constant 0 : i32
    %62 = arith.cmpi ne, %61, %c0_i32_36 : i32
    scf.if %62 {
      %c0_37 = arith.constant 0 : index
      %c0_38 = arith.constant 0 : index
      %63 = vector.load %arg16[%c0_37, %c0_38] : memref<1x1xf32, #tpu.memory_space<vmem>>, vector<1x1xf32>
      %64 = tpu.reciprocal %63 {approx = true} : vector<1x1xf32> -> vector<1x1xf32>
      %c0_39 = arith.constant 0 : index
      %c0_40 = arith.constant 0 : index
      %65 = vector.load %arg14[%c0_39, %c0_40] : memref<1x128xf32, #tpu.memory_space<vmem>>, vector<1x128xf32>
      %66 = vector.broadcast %64 : vector<1x1xf32> to vector<1x128xf32>
      %67 = arith.mulf %65, %66 : vector<1x128xf32>
      %c0_41 = arith.constant 0 : index
      %c0_42 = arith.constant 0 : index
      %68 = vector.load %arg13[%c0_41, %c0_42] : memref<1x128xf32, #tpu.memory_space<vmem>>, vector<1x128xf32>
      tpu.vector_store %arg13[%c0_41, %c0_42], %67 {strides = array<i32>} : memref<1x128xf32, #tpu.memory_space<vmem>>, vector<1x128xf32>,
      %c0_43 = arith.constant 0 : index
      %c0_44 = arith.constant 0 : index
      %69 = vector.load %arg7[%c0_43, %c0_44] : memref<128x4xf32, #tpu.memory_space<vmem>>, vector<128x4xf32>
      %cst_45 = arith.constant dense<0.000000e+00> : vector<1x4xf32>
      %70 = tpu.matmul %67, %69, %cst_45 {dimension_numbers = #tpu.dot_dimension_numbers<[1], [0], [0], [1], [0, 0, 1, 1], [], []>} : vector<1x128xf32>, vector<128x4xf32>, vector<1x4xf32> -> vector<1x4xf32>
      %c0_46 = arith.constant 0 : index
      %c0_47 = arith.constant 0 : index
      %71 = vector.load %arg8[%c0_46, %c0_47] : memref<1x4xf32, #tpu.memory_space<vmem>>, vector<1x4xf32>
      %72 = arith.addf %70, %71 : vector<1x4xf32>
      %c0_48 = arith.constant 0 : index
      %c0_49 = arith.constant 0 : index
      %73 = vector.load %arg12[%c0_48, %c0_49] : memref<1x4xf32, #tpu.memory_space<vmem>>, vector<1x4xf32>
      tpu.vector_store %arg12[%c0_48, %c0_49], %72 {strides = array<i32>} : memref<1x4xf32, #tpu.memory_space<vmem>>, vector<1x4xf32>,
      %74 = arith.negf %72 : vector<1x4xf32>
      %75 = math.exp %74 : vector<1x4xf32>
      %cst_50 = arith.constant 1.000000e+00 : f32
      %76 = vector.broadcast %cst_50 : f32 to vector<1x4xf32>
      %77 = arith.addf %76, %75 : vector<1x4xf32>
      %78 = arith.divf %76, %77 : vector<1x4xf32>
      %c0_51 = arith.constant 0 : index
      %c0_52 = arith.constant 0 : index
      %79 = vector.load %arg10[%c0_51, %c0_52] : memref<1x4xf32, #tpu.memory_space<vmem>>, vector<1x4xf32>
      tpu.vector_store %arg10[%c0_51, %c0_52], %78 {strides = array<i32>} : memref<1x4xf32, #tpu.memory_space<vmem>>, vector<1x4xf32>,
      %80 = tpu.iota {dimensions = array<i32: 0>} : vector<4x4xi32>
      %81 = tpu.iota {dimensions = array<i32: 1>} : vector<4x4xi32>
      %82 = arith.cmpi sle, %80, %81 : vector<4x4xi32>
      %83 = arith.extui %82 : vector<4x4xi1> to vector<4x4xi32>
      %84 = arith.sitofp %83 : vector<4x4xi32> to vector<4x4xf32>
      %cst_53 = arith.constant 0.000000e+00 : f32
      %85 = vector.broadcast %cst_53 : f32 to vector<1x4xf32>
      %86 = arith.maximumf %72, %85 : vector<1x4xf32>
      %87 = vector.broadcast %cst_53 : f32 to vector<1x4xf32>
      %88 = arith.subf %72, %87 : vector<1x4xf32>
      %89 = arith.cmpf one, %88, %88 : vector<1x4xf32>
      %90 = vector.broadcast %cst_53 : f32 to vector<1x4xf32>
      %91 = arith.addf %72, %90 : vector<1x4xf32>
      %92 = math.absf %88 : vector<1x4xf32>
      %cst_54 = arith.constant 0.000000e+00 : f32
      %93 = vector.broadcast %cst_54 : f32 to vector<1x4xf32>
      %94 = arith.subf %93, %92 : vector<1x4xf32>
      %95 = math.exp %94 : vector<1x4xf32>
      %96 = math.log1p %95 : vector<1x4xf32>
      %97 = arith.addf %86, %96 : vector<1x4xf32>
      %98 = arith.select %89, %91, %97 : vector<1x4xi1>, vector<1x4xf32>
      %cst_55 = arith.constant 0.000000e+00 : f32
      %99 = vector.broadcast %cst_55 : f32 to vector<1x4xf32>
      %100 = arith.subf %99, %98 : vector<1x4xf32>
      %cst_56 = arith.constant dense<0.000000e+00> : vector<1x4xf32>
      %101 = tpu.matmul %100, %84, %cst_56 {dimension_numbers = #tpu.dot_dimension_numbers<[1], [0], [0], [1], [0, 0, 1, 1], [], []>} : vector<1x4xf32>, vector<4x4xf32>, vector<1x4xf32> -> vector<1x4xf32>
      %102 = math.exp %101 : vector<1x4xf32>
      %c0_57 = arith.constant 0 : index
      %c0_58 = arith.constant 0 : index
      %103 = vector.load %arg11[%c0_57, %c0_58] : memref<1x4xf32, #tpu.memory_space<vmem>>, vector<1x4xf32>
      tpu.vector_store %arg11[%c0_57, %c0_58], %102 {strides = array<i32>} : memref<1x4xf32, #tpu.memory_space<vmem>>, vector<1x4xf32>,
    } else {
    }
    return
  }
  func.func @transform_0(%arg0: i32) -> (i32, i32) {
    %c0_i32 = arith.constant 0 : i32
    %c0_i32_0 = arith.constant 0 : i32
    return %arg0, %c0_i32 : i32, i32
  }
  func.func @transform_1(%arg0: i32) -> (i32, i32) {
    %c0_i32 = arith.constant 0 : i32
    %c0_i32_0 = arith.constant 0 : i32
    %c0_i32_1 = arith.constant 0 : i32
    return %c0_i32, %c0_i32_0 : i32, i32
  }
  func.func @transform_2(%arg0: i32) -> (i32, i32) {
    %c0_i32 = arith.constant 0 : i32
    %c0_i32_0 = arith.constant 0 : i32
    %c0_i32_1 = arith.constant 0 : i32
    return %c0_i32, %c0_i32_0 : i32, i32
  }
  func.func @transform_3(%arg0: i32) -> (i32, i32) {
    %c0_i32 = arith.constant 0 : i32
    %c0_i32_0 = arith.constant 0 : i32
    %c0_i32_1 = arith.constant 0 : i32
    return %c0_i32, %c0_i32_0 : i32, i32
  }
  func.func @transform_4(%arg0: i32) -> (i32, i32) {
    %c0_i32 = arith.constant 0 : i32
    %c0_i32_0 = arith.constant 0 : i32
    %c0_i32_1 = arith.constant 0 : i32
    return %c0_i32, %c0_i32_0 : i32, i32
  }
  func.func @transform_5(%arg0: i32) -> (i32, i32) {
    %c0_i32 = arith.constant 0 : i32
    %c0_i32_0 = arith.constant 0 : i32
    %c0_i32_1 = arith.constant 0 : i32
    return %c0_i32, %c0_i32_0 : i32, i32
  }
  func.func @transform_6(%arg0: i32) -> (i32, i32) {
    %c0_i32 = arith.constant 0 : i32
    %c0_i32_0 = arith.constant 0 : i32
    %c0_i32_1 = arith.constant 0 : i32
    return %c0_i32, %c0_i32_0 : i32, i32
  }
  func.func @transform_7(%arg0: i32) -> (i32, i32) {
    %c0_i32 = arith.constant 0 : i32
    %c0_i32_0 = arith.constant 0 : i32
    %c0_i32_1 = arith.constant 0 : i32
    return %c0_i32, %c0_i32_0 : i32, i32
  }
  func.func @transform_8(%arg0: i32) -> (i32, i32) {
    %c0_i32 = arith.constant 0 : i32
    %c0_i32_0 = arith.constant 0 : i32
    return %c0_i32, %arg0 : i32, i32
  }
  func.func @transform_9(%arg0: i32) -> (i32, i32) {
    %c0_i32 = arith.constant 0 : i32
    %c0_i32_0 = arith.constant 0 : i32
    %c0_i32_1 = arith.constant 0 : i32
    return %c0_i32, %c0_i32_0 : i32, i32
  }
  func.func @transform_10(%arg0: i32) -> (i32, i32) {
    %c0_i32 = arith.constant 0 : i32
    %c0_i32_0 = arith.constant 0 : i32
    %c0_i32_1 = arith.constant 0 : i32
    return %c0_i32, %c0_i32_0 : i32, i32
  }
  func.func @transform_11(%arg0: i32) -> (i32, i32) {
    %c0_i32 = arith.constant 0 : i32
    %c0_i32_0 = arith.constant 0 : i32
    %c0_i32_1 = arith.constant 0 : i32
    return %c0_i32, %c0_i32_0 : i32, i32
  }
  func.func @transform_12(%arg0: i32) -> (i32, i32) {
    %c0_i32 = arith.constant 0 : i32
    %c0_i32_0 = arith.constant 0 : i32
    %c0_i32_1 = arith.constant 0 : i32
    return %c0_i32, %c0_i32_0 : i32, i32
  }
}

</mosaic_0001>

<bundles_post_ra>
// kernel: tpu_custom_call.1
= control target key start
LH: loop header
LB: loop body
LE: loop exit
PB: predicated region body
PF: predicated region fallthrough
CT: control target
= control target key end

     0   :  { %s3087_s0 = inlined_call_operand.hbm [shape: bf16[512,128], index: 0, kind: input, shape index: {}]   ;;  %s3088_s1 = inlined_call_operand.hbm [shape: bf16[128,128], index: 1, kind: input, shape index: {}]   ;;  %s3089_s2 = inlined_call_operand.vmem [shape: f32[1,128], index: 2, kind: input, shape index: {}]   ;;  %s3090_s3 = inlined_call_operand.vmem [shape: bf16[128,256], index: 3, kind: input, shape index: {}]   ;;  %s3091_s4 = inlined_call_operand.vmem [shape: f32[1,256], index: 4, kind: input, shape index: {}]   ;;  %s3092_s5 = inlined_call_operand.vmem [shape: f32[1,128], index: 5, kind: input, shape index: {}]   ;;  %s3093_s6 = inlined_call_operand.vmem [shape: f32[128,4], index: 6, kind: input, shape index: {}]   ;;  %s3094_s7 = inlined_call_operand.vmem [shape: f32[1,4], index: 7, kind: input, shape index: {}]   ;;  %s3095_s8 = inlined_call_operand.hbm [shape: f32[1,512], index: 8, kind: output, shape index: {0}]   ;;  %s3096_s9 = inlined_call_operand.hbm [shape: f32[1,4], index: 9, kind: output, shape index: {1}]   ;;  %s3097_s10 = inlined_call_operand.hbm [shape: f32[1,4], index: 10, kind: output, shape index: {2}]   ;;  %s3098_s11 = inlined_call_operand.hbm [shape: f32[1,4], index: 11, kind: output, shape index: {3}]   ;;  %s3099_s12 = inlined_call_operand.hbm [shape: f32[1,128], index: 12, kind: output, shape index: {4}]  }
   0x1   :  { %3110 = sst [smem:[#allocation25_spill]] %s3097_s10 }
   0x2   :  { %3111 = sst [smem:[#allocation26_spill]] %s3099_s12 }
   0x3   :  { %18 = vsyncpa [#allocation6], 0 }
   0x4   :  { %20 = vsyncpa [#allocation6 + $0x1], 0 }
   0x5   :  { %21 = vsyncpa [#allocation9], 0 }
   0x6   :  { %22 = vsyncpa [#allocation7], 0 }
   0x7   :  { %24 = vsyncpa [#allocation7 + $0x1], 0 }
   0x8   :  { %25 = vsyncpa [#allocation12], 0 }
   0x9   :  { %26 = vsyncpa [#allocation15], 0  ;;  %s2577_s21 = smov 0   ;;  %s2579_s22 = smov 0  }
   0xa   :  { %s2581_s23 = smov 0   ;;  %s2583_s24 = smov 0  }
   0xb LB: > { %3112 = sst [smem:[#allocation22_spill]] %s2479_s21  ;;  %s2598_s25 = sadd.s32 4294967295, %s2491_s24   ;;  %s2491_s24 = sphi %s2583_s24, %s3147_s24   ;;  %s2487_s23 = sphi %s2581_s23, %s3150_s23   ;;  %s2483_s22 = sphi %s2579_s22, %s3149_s22   ;;  %s2479_s21 = sphi %s2577_s21, %s3148_s21  }
   0xc   : > { %s1638_s26 = sadd.s32 4294967294, %s2491_s24   ;;  %p52_p0 = scmp.ne.s32.totalorder %s2483_s22, %s2479_s21 }
   0xd   : > { %p3103_p1 = scmp.eq.s32.totalorder %s2598_s25, 0  ;;  %p229_p3 = scmp.eq.s32.totalorder %s1638_s26, 3 }
   0xe   : > { %p1639_p5 = scmp.ge.s32.totalorder %s2491_s24, 1  ;;  %p320_p7 = scmp.lt.s32.totalorder %s2491_s24, 5 }
   0xf   : > { %p2607_p4 = por %p3103_p1, %p52_p0  ;;  %p2612_p6 = por %p229_p3, %p52_p0 }
  0x10   : > { %p2618_p9 = pnand %p1639_p5, %p320_p7  ;;  %s2493_s30 = smov [#allocation8]  }
  0x11   : > { %s3113_s27 = scalar_select %p2607_p4, 1, 0 }
  0x12   : > { %s3114_s28 = scalar_select %p2612_p6, 1, 0 }
  0x13   : > { %s3116_s29 = scalar_select %p2618_p9, 1, 0 }
  0x14   : > { %3115 = sst [smem:[#allocation23_spill]] %s3114_s28  ;;  %s332_s13 = sshll.u32 %s2493_s30, 4  ;;  %s333_s13 = int_to_ptr.vmem [resolvable:$true] %s332_s13 }
  0x15   : > { %p2023_p10 = pneg %p2618_p9  ;;  %s2631_s15 = sadd.s32 1, %s2491_s24  }
  0x16   : > { %3118 = sst [smem:[#allocation24_spill]] %s2631_s15  ;;  %s39_s16 = sadd.s32 1, %s2487_s23 }
  0x17   : > { %p2626_p11 = pnand %p2023_p10, %p3103_p1  ;;  %s36_s17 = ssub.s32 %s2491_s24, %s2631_s15 }
  0x18   : > { %s2251_s20 = scalar_lea.hbm %s3088_s1, 1024 }
  0x19   : > { %p2252_p12 = scmp.ne.s32.totalorder %s3088_s1, %s2251_s20  ;;  %p2253_p13 = pneg %p2626_p11 }
  0x1a   : > { %p2258_p5 = scmp.lt.u32.totalorder %s2251_s20, %s3088_s1 }
  0x1b   : > { %p2254_p0 = pnand %p2253_p13, %p2252_p12 }
  0x1d   : > { %p2255_p3 = pneg %p2254_p0 }
  0x1f   : > { %p2260_p7 = pnand %p2258_p5, %p2255_p3 }
  0x21   : > { %2263 = shalt.err (!%p2260_p7)
}
  0x22   : > { %s2264_s12 = scalar_lea.vmem %s333_s13, 1024  ;;  %p2272_p2 = scmp.lt.s32.totalorder %s333_s13, %s333_s13 }
  0x23   : > { %p2265_p10 = scmp.ne.s32.totalorder %s333_s13, %s2264_s12  ;;  %p2273_p6 = scmp.lt.s32.totalorder %s2264_s12, %s2264_s12 }
  0x25   : > { %p2267_p8 = pnand %p2265_p10, %p2253_p13  ;;  %p2274_p4 = por %p2273_p6, %p2272_p2 }
  0x27   : > { %p2268_p1 = pneg %p2267_p8 }
  0x29   : > { %p2275_p9 = pnand %p2274_p4, %p2268_p1 }
  0x2b   : > { %2278 = shalt.err (!%p2275_p9)
}
  0x2c   : > { %s3109_s18 = smov 64   ;;  %s2495_s21 = smov 4  }
  0x2d   : > { %2026 = dma.hbm_to_vmem [thread:$0]  (!%p2626_p11), %s3088_s1, 1024, %s333_s13, [#allocation9], %s3109_s18, %s3109_s18, %s2495_s21  }
  0x2e   : > { %p37_p1 = scmp.eq.s32.totalorder %s36_s17, 0  ;;  %p46_p2 = scmp.ne.s32.totalorder %s2487_s23, %s2483_s22 }
  0x2f   : > { %p47_p4 = scmp.eq.s32.totalorder %s2491_s24, 0  ;;  %p2036_p6 = scmp.lt.s32.totalorder %s2491_s24, 4 }
  0x30   : > { %s2660_s19 = scalar_select %p37_p1, %s2487_s23, %s39_s16  }
  0x31   : > { %p48_p8 = por %p47_p4, %p46_p2  ;;  %p3119_p9 = scmp.eq.s32.totalorder %s2598_s25, 3 }
  0x32   : > { %s364_s14 = sand.u32 1, %s2487_s23   ;;  %s1715_s26 = sshll.u32 %s2491_s24, 10 }
  0x33   : > { %p2664_p12 = por %p3119_p9, %p46_p2  ;;  %s1642_s30 = sshll.u32 %s364_s14, 6 }
  0x34   : > { %s2673_s28 = scalar_lea.hbm %s3087_s0, %s1715_s26  ;;  %s368_s13 = scalar_lea.vmem [#allocation5], %s1642_s30 }
  0x35   : > { %s375_s16 = sshll.u32 %s368_s13, 4  ;;  %p2675_p11 = pnand %p2036_p6, %p48_p8  ;;  %s2679_s16 = int_to_ptr.vmem [resolvable:$true] %s375_s16 }
  0x36   : > { %s2681_s12 = scalar_lea.sflag [#allocation6], %s364_s14  ;;  %s2279_s18 = scalar_lea.hbm %s2673_s28, 1024 }
  0x37   : > { %p2280_p13 = scmp.ne.s32.totalorder %s2673_s28, %s2279_s18  ;;  %p2281_p0 = pneg %p2675_p11 }
  0x38   : > { %s2284_s26 = scalar_lea.hbm %s3087_s0, 4096  ;;  %p2285_p7 = scmp.lt.u32.totalorder %s2673_s28, %s3087_s0 }
  0x39   : > { %p2282_p3 = pnand %p2281_p0, %p2280_p13  ;;  %p2286_p10 = scmp.lt.u32.totalorder %s2284_s26, %s2279_s18 }
  0x3a   : > { %p2288_p2 = scmp.lt.u32.totalorder %s2279_s18, %s2673_s28 }
  0x3b   : > { %p2283_p5 = pneg %p2282_p3  ;;  %p2287_p1 = por %p2286_p10, %p2285_p7 }
  0x3d   : > { %p2289_p4 = por %p2288_p2, %p2287_p1 }
  0x3f   : > { %p2290_p6 = pnand %p2289_p4, %p2283_p5 }
  0x41   : > { %2293 = shalt.err (!%p2290_p6)
}
  0x42   : > { %s2294_s14 = scalar_lea.vmem %s2679_s16, 1024  ;;  %s2496_s10 = smov [#allocation5]  }
  0x43   : > { %p2295_p8 = scmp.ne.s32.totalorder %s2679_s16, %s2294_s14  ;;  %s2299_s15 = sshll.u32 %s2496_s10, 4  ;;  %s2300_s15 = int_to_ptr.vmem [resolvable:$false] %s2299_s15 }
  0x44   : > { %s2301_s30 = scalar_lea.vmem %s2300_s15, 2048  ;;  %p2302_p3 = scmp.lt.s32.totalorder %s2679_s16, %s2300_s15 }
  0x45   : > { %p2297_p9 = pnand %p2295_p8, %p2281_p0  ;;  %p2303_p7 = scmp.lt.s32.totalorder %s2301_s30, %s2294_s14 }
  0x47   : > { %p2298_p13 = pneg %p2297_p9  ;;  %p2304_p10 = por %p2303_p7, %p2302_p3 }
  0x49   : > { %p2305_p1 = pnand %p2304_p10, %p2298_p13 }
  0x4b   : > { %2308 = shalt.err (!%p2305_p1)
}
  0x4c   : > { %s3122_s18 = smov 64   ;;  %p3123_p0 = scmp.ne.s32.totalorder %s3116_s29, 0 }
  0x4d   : > { %2030 = dma.hbm_to_vmem [thread:$0]  (!%p2675_p11), %s2673_s28, 1024, %s2679_s16, %s2681_s12, %s3122_s18, %s3122_s18, %s2495_s21  }
  0x4e   : > { %387 = sbr.rel (%p3123_p0) target bundleno = 2072 (0x818), region = 52  ;;  %s2715_s26 = sand.u32 (!%p3123_p0), 1, %s2483_s22  }
  0x4f   : > { %s1646_s13 = sshll.u32 (!%p3123_p0), %s2715_s26, 6  ;;  %s390_s14 = scalar_lea.sflag (!%p3123_p0), [#allocation6], %s2715_s26 }
  0x50   : > { %s2719_s10 = scalar_lea.vmem (!%p3123_p0), [#allocation5], %s1646_s13  ;;  %p3124_p5 = scmp.ne.s32.totalorder (!%p3123_p0), %s3113_s27, 0 }
  0x55   : > { %2458 = dma.done.wait (%p3124_p5), %s390_s14, 1024  }
  0x56   : > { %2460 = vsyncadd (%p3124_p5), %s390_s14, 4294966272  ;;  %p3125_p11 = scmp.eq.s32.totalorder %s2598_s25, 0 }
  0x58   : > { %2462 = dma.done.wait (%p3125_p11), [#allocation9], 1024   ;;  %p3126_p2 = pmov %p3125_p11 }
  0x59   : > { %s428_s29 = scalar_lea.vmem [#allocation10], %s2715_s26  ;;  %p3127_p4 = scmp.ne.s32.totalorder %s2598_s25, 0 }
  0x5a   : > { %2464 = vsyncadd (%p3126_p2), [#allocation9], 4294966272  ;;  %vm443_vm0 = vcmask (!%p3127_p4), 0   ;;  %v2497_v0 = vmov (!%p3127_p4), -1e+30   ;;  %v2498_v1 = vmov (!%p3127_p4), 0.0  }
  0x5b   : > { %442 = sbr.rel (%p3127_p4) target bundleno = 98 (0x62), region = 64  ;;  %444 = vst.msk [vmem:[#allocation3] sm:$0x1] (!%p3127_p4), %vm443_vm0, %v2497_v0  ;;  %445 = vst.msk [vmem:[#allocation4] sm:$0x1] (!%p3127_p4), %vm443_vm0, %v2498_v1 }
  0x5c   : > { %446 = vst [vmem:[#allocation2] sm:$0x1] (!%p3127_p4), %v2498_v1 }
  0x62 PF: > { %v2098_v2 = vld [vmem:[#allocation8] sm:$0xff]   ;;  %v2099_v3 = vld [vmem:[#allocation8 + $0x8] sm:$0xff]   ;;  %v2100_v4 = vld [vmem:[#allocation8 + $0x10] sm:$0xff]   ;;  %v2499_v34 = vmov 0   ;;  %v2500_v35 = vmov 0.0|0.0   ;;  %vm2501_vm1 = vmmov 0  }
  0x63   : > { %1785 = vmatprep.subr.bf16.mxu0 %v2098_v2  ;;  %v2101_v5 = vld [vmem:[#allocation8 + $0x18] sm:$0xff]   ;;  %v2106_v6 = vld [vmem:[%s2719_s10] sm:$0xff]   ;;  %v2103_v8 = vld [vmem:[#allocation8 + $0x28] sm:$0xff]   ;;  %843 = vmatprep.mubr.bf16.mxu1 %v2499_v34  ;;  %s1698_s17 = sshll.u32 %s2598_s25, 7  ;;  %vm1131_vm3 = vcmask 1040384   ;;  %vm1158_vm4 = vcmask 0  }
  0x64   : > { %1786 = vmatpush3.bf16.msra.mxu0 %v2098_v2  ;;  %1801 = vmatprep.mubr.bf16.mxu0 %v2106_v6  ;;  %v2102_v7 = vld [vmem:[#allocation8 + $0x20] sm:$0xff]   ;;  %v2117_v11 = vld [vmem:[%s3090_s3 + $0x14] ss:$8 sps:$4 sm:$0xff]   ;;  %v2119_v13 = vld [vmem:[%s3090_s3 + $0x10] ss:$8 sps:$4 sm:$0xff]   ;;  %p1699_p6 = scmp.ne.s32.totalorder %s2598_s25, 3 }
  0x65   : > { %1787 = vmatprep.subr.bf16.mxu0 %v2099_v3  ;;  %v2114_v9 = vld [vmem:[%s3090_s3 + $0x4] ss:$8 sps:$4 sm:$0xff]   ;;  %v2116_v10 = vld [vmem:[%s3090_s3] ss:$8 sps:$4 sm:$0xff]   ;;  %v2104_v12 = vld [vmem:[#allocation8 + $0x30] sm:$0xff]   ;;  %2096 = vset.pattern.permute.xlu0 %v2499_v34  ;;  %vm2505_vm5 = vmmov (!%p1699_p6), 0  }
  0x66   : > { %811 = vmatprep.subr.bf16.mxu1 %v2114_v9  ;;  %v2120_v14 = vld [vmem:[%s3090_s3 + $0x24] ss:$8 sps:$4 sm:$0xff]   ;;  %v2105_v15 = vld [vmem:[#allocation8 + $0x38] sm:$0xff]   ;;  %v2108_v21 = vld [vmem:[%s2719_s10 + $0x10] sm:$0xff]   ;;  %2097 = vset.pattern.permute.xlu1 %v2499_v34  ;;  %vm1386_vm7 = vcmask (!%p1699_p6), 1043456   ;;  %vm1349_vm8 = vcmask (!%p1699_p6), 24576  }
  0x67   : > { %812 = vmatpush1.bf16.msra.mxu1 %v2116_v10  ;;  %v2122_v16 = vld [vmem:[%s3090_s3 + $0x20] ss:$8 sps:$4 sm:$0xff]   ;;  %v2123_v17 = vld [vmem:[%s3090_s3 + $0x34] ss:$8 sps:$4 sm:$0xff]   ;;  %v2125_v18 = vld [vmem:[%s3090_s3 + $0x30] ss:$8 sps:$4 sm:$0xff]  }
  0x68   : > { %1788 = vmatpush3.bf16.msra.mxu0 %v2099_v3  ;;  %813 = vmatprep.subr.bf16.mxu1 %v2117_v11  ;;  %v2126_v19 = vld [vmem:[%s3090_s3 + $0x44] ss:$8 sps:$4 sm:$0xff]   ;;  %v2128_v22 = vld [vmem:[%s3090_s3 + $0x40] ss:$8 sps:$4 sm:$0xff]   ;;  %v2129_v23 = vld [vmem:[%s3090_s3 + $0x54] ss:$8 sps:$4 sm:$0xff]  }
  0x69   : > { %1789 = vmatprep.subr.bf16.mxu0 %v2100_v4  ;;  %v2107_v20 = vld [vmem:[%s2719_s10 + $0x8] sm:$0xff]   ;;  %v2109_v25 = vld [vmem:[%s2719_s10 + $0x18] sm:$0xff]   ;;  %v2110_v26 = vld [vmem:[%s2719_s10 + $0x20] sm:$0xff]   ;;  %vm1382_vm11 = vcmask (!%p1699_p6), 31744  }
  0x6a   : > { %v2131_v24 = vld [vmem:[%s3090_s3 + $0x50] ss:$8 sps:$4 sm:$0xff]   ;;  %v2132_v30 = vld [vmem:[%s3090_s3 + $0x64] ss:$8 sps:$4 sm:$0xff]   ;;  %v2134_v31 = vld [vmem:[%s3090_s3 + $0x60] ss:$8 sps:$4 sm:$0xff]  }
  0x6b   : > { %814 = vmatpush1.bf16.msra.mxu1 %v2119_v13  ;;  %v2111_v27 = vld [vmem:[%s2719_s10 + $0x28] sm:$0xff]   ;;  %v2112_v28 = vld [vmem:[%s2719_s10 + $0x30] sm:$0xff]   ;;  %v2113_v29 = vld [vmem:[%s2719_s10 + $0x38] sm:$0xff]  }
  0x6c   : > { %1790 = vmatpush3.bf16.msra.mxu0 %v2100_v4  ;;  %815 = vmatprep.subr.bf16.mxu1 %v2120_v14  ;;  %v2135_v32 = vld [vmem:[%s3090_s3 + $0x74] ss:$8 sps:$4 sm:$0xff]   ;;  %v2137_v33 = vld [vmem:[%s3090_s3 + $0x70] ss:$8 sps:$4 sm:$0xff]   ;;  %v2796_v36 = vld [vmem:[%s3089_s2] ss:$0 sm:$0xff] }
  0x6d   : > { %1791 = vmatprep.subr.bf16.mxu0 %v2101_v5 }
  0x6f   : > { %816 = vmatpush1.bf16.msra.mxu1 %v2122_v16 }
  0x70   : > { %1792 = vmatpush3.bf16.msra.mxu0 %v2101_v5  ;;  %817 = vmatprep.subr.bf16.mxu1 %v2123_v17 }
  0x71   : > { %1793 = vmatprep.subr.bf16.mxu0 %v2102_v7 }
  0x73   : > { %818 = vmatpush1.bf16.msra.mxu1 %v2125_v18 }
  0x74   : > { %1794 = vmatpush3.bf16.msra.mxu0 %v2102_v7  ;;  %819 = vmatprep.subr.bf16.mxu1 %v2126_v19 }
  0x75   : > { %1795 = vmatprep.subr.bf16.mxu0 %v2103_v8 }
  0x77   : > { %820 = vmatpush1.bf16.msra.mxu1 %v2128_v22 }
  0x78   : > { %1796 = vmatpush3.bf16.msra.mxu0 %v2103_v8  ;;  %821 = vmatprep.subr.bf16.mxu1 %v2129_v23 }
  0x79   : > { %1797 = vmatprep.subr.bf16.mxu0 %v2104_v12 }
  0x7b   : > { %822 = vmatpush1.bf16.msra.mxu1 %v2131_v24 }
  0x7c   : > { %1798 = vmatpush3.bf16.msra.mxu0 %v2104_v12  ;;  %823 = vmatprep.subr.bf16.mxu1 %v2132_v30  ;;  %v721_v30 = vlaneseq }
  0x7d   : > { %1799 = vmatprep.subr.bf16.mxu0 %v2105_v15 }
  0x7f   : > { %824 = vmatpush1.bf16.msra.mxu1 %v2134_v31  ;;  %v2829_v31 = vshrl.u32 %v721_v30, 7 }
  0x80   : > { %1800 = vmatpush3.bf16.msra.mxu0 %v2105_v15  ;;  %825 = vmatprep.subr.bf16.mxu1 %v2135_v32 }
  0x81   : > { %1927 = vmatprep.subr.bf16.mxu0 %v2500_v35  ;;  %v727_v32 = vsub.s32 1, %v2829_v31 }
  0x83   : > { %1802 = vmatmul.mubr.bf16.vlgmr.msra.gmra.mrb[0].mxu0 %v2107_v20  ;;  %826 = vmatpush1.bf16.msra.mxu1 %v2137_v33  ;;  %v719_v33 = vld [vmem:[%s3091_s4] sm:$0x3] }
  0x84   : > { %1805 = vmatprep.mubr.bf16.mxu0 %v2108_v21  ;;  %1951 = vmatprep.subr.bf16.mxu1 %v2500_v35 }
  0x8b   : > { %1806 = vmatmul.mubr.bf16.gmra.mrb[4].mxu0 %v2109_v25 }
  0x8c   : > { %1809 = vmatprep.mubr.bf16.mxu0 %v2110_v26 }
  0x93   : > { %1810 = vmatmul.mubr.bf16.gmra.mrb[8].mxu0 %v2111_v27 }
  0x94   : > { %1813 = vmatprep.mubr.bf16.mxu0 %v2112_v28 }
  0x9b   : > { %1814 = vmatmul.mubr.bf16.gmra.mrb[12].mxu0 %v2113_v29  ;;  %v2502_v29 = vmov 0.0  }
  0x9c   : > { %1849 = vmatprep.mubr.msk.f32.mxu0 %vm2501_vm1, %v2502_v29 }
 0x156   : > { %v1803_v37 = vpop.f32.mrb[0].mxu0 }
 0x157   : > { %v625_v38 = vadd.f32 %v1803_v37, %v2796_v36  ;;  %v616_v39 = vpop.f32.mrb[1].mxu0 }
 0x158   : > { %v617_v40 = vadd.f32 %v2796_v36, %v616_v39  ;;  %v1804_v41 = vpop.f32.mrb[2].mxu0 }
 0x159   : > { %v628_v42 = vadd.f32 %v1804_v41, %v2796_v36  ;;  %v619_v43 = vpop.f32.mrb[3].mxu0  ;;  %v681_v45 = vmax.f32 %v625_v38, 0.0 }
 0x15a   : > { %v620_v44 = vadd.f32 %v2796_v36, %v619_v43  ;;  %v679_v47 = vmax.f32 %v617_v40, 0.0  ;;  %v2840_v43 = vsub.s32 0, %v2829_v31 }
 0x15b   : > { %v682_v46 = vmax.f32 %v628_v42, 0.0 }
 0x15c   : > { %v680_v48 = vmax.f32 %v620_v44, 0.0 }
 0x15d   : > { %v696_v49 = vpack.c.bf16 %v682_v46, %v681_v45 }
 0x15e   : > { %v695_v50 = vpack.c.bf16 %v680_v48, %v679_v47  ;;  %v1807_v51 = vpop.f32.mrb[4].mxu0  ;;  %v2843_v47 = vrot.slane %v719_v33, %v2840_v43 }
 0x15f   : > { %v641_v52 = vadd.f32 %v1807_v51, %v2796_v36  ;;  %v632_v53 = vpop.f32.mrb[5].mxu0 }
 0x160   : > { %v633_v54 = vadd.f32 %v2796_v36, %v632_v53  ;;  %844 = vmatmul.mubr.bf16.vlgmr.msra.gmra.mrb[0].mxu1 %v695_v50  ;;  %v1808_v55 = vpop.f32.mrb[6].mxu0 }
 0x161   : > { %v685_v56 = vmax.f32 %v641_v52, 0.0  ;;  %1953 = vmatpush3.bf16.msra.mxu1 %v695_v50  ;;  %v644_v57 = vadd.f32 %v1808_v55, %v2796_v36  ;;  %v635_v58 = vpop.f32.mrb[7].mxu0  ;;  %853 = vmatprep.mubr.bf16.mxu1 %v2499_v34 }
 0x162   : > { %v683_v59 = vmax.f32 %v633_v54, 0.0  ;;  %v636_v60 = vadd.f32 %v2796_v36, %v635_v58  ;;  %1954 = vmatprep.subr.bf16.mxu1 %v2500_v35 }
 0x163   : > { %v686_v61 = vmax.f32 %v644_v57, 0.0 }
 0x164   : > { %v684_v62 = vmax.f32 %v636_v60, 0.0 }
 0x165   : > { %v698_v63 = vpack.c.bf16 %v686_v61, %v685_v56  ;;  %1956 = vmatpush3.bf16.msra.mxu1 %v696_v49 }
 0x166   : > { %v697_v0 = vpack.c.bf16 %v684_v62, %v683_v59  ;;  %1957 = vmatprep.subr.bf16.mxu1 %v2500_v35  ;;  %v1811_v1 = vpop.f32.mrb[8].mxu0 }
 0x167   : > { %v657_v2 = vadd.f32 %v1811_v1, %v2796_v36  ;;  %v648_v3 = vpop.f32.mrb[9].mxu0 }
 0x168   : > { %854 = vmatmul.mubr.bf16.gmra.mrb[4].mxu1 %v696_v49  ;;  %v649_v4 = vadd.f32 %v2796_v36, %v648_v3  ;;  %v1812_v5 = vpop.f32.mrb[10].mxu0 }
 0x169   : > { %1959 = vmatpush3.bf16.msra.mxu1 %v697_v0  ;;  %v689_v6 = vmax.f32 %v657_v2, 0.0  ;;  %863 = vmatprep.mubr.bf16.mxu1 %v2499_v34  ;;  %v660_v7 = vadd.f32 %v1812_v5, %v2796_v36  ;;  %v651_v8 = vpop.f32.mrb[11].mxu0 }
 0x16a   : > { %1960 = vmatprep.subr.bf16.mxu1 %v2500_v35  ;;  %v687_v9 = vmax.f32 %v649_v4, 0.0  ;;  %v652_v10 = vadd.f32 %v2796_v36, %v651_v8 }
 0x16b   : > { %v690_v11 = vmax.f32 %v660_v7, 0.0 }
 0x16c   : > { %v688_v12 = vmax.f32 %v652_v10, 0.0 }
 0x16d   : > { %1962 = vmatpush3.bf16.msra.mxu1 %v698_v63  ;;  %v700_v13 = vpack.c.bf16 %v690_v11, %v689_v6 }
 0x16e   : > { %v699_v14 = vpack.c.bf16 %v688_v12, %v687_v9  ;;  %1963 = vmatprep.subr.bf16.mxu1 %v2500_v35  ;;  %v1815_v15 = vpop.f32.mrb[12].mxu0 }
 0x16f   : > { %v673_v16 = vadd.f32 %v1815_v15, %v2796_v36  ;;  %v664_v17 = vpop.f32.mrb[13].mxu0 }
 0x170   : > { %864 = vmatmul.mubr.bf16.gmra.mrb[8].mxu1 %v697_v0  ;;  %v665_v18 = vadd.f32 %v2796_v36, %v664_v17  ;;  %v1816_v19 = vpop.f32.mrb[14].mxu0 }
 0x171   : > { %873 = vmatprep.mubr.bf16.mxu1 %v2499_v34  ;;  %1965 = vmatpush3.bf16.msra.mxu1 %v699_v14  ;;  %v693_v20 = vmax.f32 %v673_v16, 0.0  ;;  %v676_v21 = vadd.f32 %v1816_v19, %v2796_v36  ;;  %v667_v22 = vpop.f32.mrb[15].mxu0 }
 0x172   : > { %1966 = vmatprep.subr.bf16.mxu1 %v2500_v35  ;;  %v691_v23 = vmax.f32 %v665_v18, 0.0  ;;  %v668_v24 = vadd.f32 %v2796_v36, %v667_v22  ;;  %v2835_v36 = vrot.slane %v719_v33, %v727_v32 }
 0x173   : > { %v694_v25 = vmax.f32 %v676_v21, 0.0 }
 0x174   : > { %v692_v26 = vmax.f32 %v668_v24, 0.0 }
 0x175   : > { %1968 = vmatpush3.bf16.msra.mxu1 %v700_v13  ;;  %v702_v27 = vpack.c.bf16 %v694_v25, %v693_v20 }
 0x176   : > { %v701_v28 = vpack.c.bf16 %v692_v26, %v691_v23  ;;  %1969 = vmatprep.subr.bf16.mxu1 %v2500_v35 }
 0x178   : > { %874 = vmatmul.mubr.bf16.gmra.mrb[12].mxu1 %v698_v63 }
 0x179   : > { %883 = vmatprep.mubr.bf16.mxu1 %v2499_v34  ;;  %1971 = vmatpush3.bf16.msra.mxu1 %v701_v28 }
 0x17a   : > { %1972 = vmatprep.subr.bf16.mxu1 %v2500_v35 }
 0x17d   : > { %1974 = vmatpush3.bf16.msra.mxu1 %v702_v27 }
 0x180   : > { %884 = vmatmul.mubr.bf16.gmra.mrb[16].mxu1 %v699_v14 }
 0x181   : > { %893 = vmatprep.mubr.bf16.mxu1 %v2499_v34 }
 0x188   : > { %894 = vmatmul.mubr.bf16.gmra.mrb[20].mxu1 %v700_v13 }
 0x189   : > { %903 = vmatprep.mubr.bf16.mxu1 %v2499_v34 }
 0x190   : > { %904 = vmatmul.mubr.bf16.gmra.mrb[24].mxu1 %v701_v28 }
 0x191   : > { %913 = vmatprep.mubr.bf16.mxu1 %v2499_v34 }
 0x198   : > { %914 = vmatmul.mubr.bf16.gmra.mrb[28].mxu1 %v702_v27 }
 0x199   : > { %1884 = vmatprep.mubr.msk.f32.mxu1 %vm2501_vm1, %v2502_v29 }
 0x233   : > { %v845_v37 = vpop.f32.mrb[0].mxu1 }
 0x234   : > { %v847_v38 = vpop.f32.mrb[1].mxu1  ;;  %v846_v53 = vadd.f32 %v845_v37, %v2843_v47 }
 0x235   : > { %v848_v34 = vadd.f32 %v847_v38, %v2835_v36  ;;  %v849_v39 = vpop.f32.mrb[2].mxu1 }
 0x236   : > { %v851_v40 = vpop.f32.mrb[3].mxu1  ;;  %v850_v56 = vadd.f32 %v849_v39, %v2843_v47 }
 0x237   : > { %v1682_v41 = vmul.f32 -1.442695, %v848_v34  ;;  %v852_v42 = vadd.f32 %v851_v40, %v2835_v36 }
 0x239   : > { %2138 = vpow2.f32 %v1682_v41  ;;  %v1683_v44 = vmul.f32 -1.442695, %v852_v42 }
 0x23b   : > { %2140 = vpow2.f32 %v1683_v44  ;;  %v855_v45 = vpop.f32.mrb[4].mxu1 }
 0x23c   : > { %v857_v46 = vpop.f32.mrb[5].mxu1  ;;  %v856_v3 = vadd.f32 %v855_v45, %v2843_v47 }
 0x23d   : > { %v858_v48 = vadd.f32 %v857_v46, %v2835_v36  ;;  %v859_v49 = vpop.f32.mrb[6].mxu1 }
 0x23e   : > { %v861_v50 = vpop.f32.mrb[7].mxu1  ;;  %v860_v6 = vadd.f32 %v859_v49, %v2843_v47 }
 0x23f   : > { %v1684_v51 = vmul.f32 -1.442695, %v858_v48  ;;  %v862_v52 = vadd.f32 %v861_v50, %v2835_v36 }
 0x241   : > { %2142 = vpow2.f32 %v1684_v51  ;;  %v1685_v54 = vmul.f32 -1.442695, %v862_v52 }
 0x243   : > { %v2139_v55 = vpop.eup %2138  ;;  %2144 = vpow2.f32 %v1685_v54  ;;  %v865_v57 = vpop.f32.mrb[8].mxu1 }
 0x244   : > { %v988_v58 = vadd.f32 1.0, %v2139_v55  ;;  %v867_v59 = vpop.f32.mrb[9].mxu1  ;;  %2146 = vtanh.f32 %v846_v53  ;;  %v866_v20 = vadd.f32 %v865_v57, %v2843_v47 }
 0x245   : > { %v2141_v60 = vpop.eup %2140  ;;  %v868_v61 = vadd.f32 %v867_v59, %v2835_v36  ;;  %v869_v62 = vpop.f32.mrb[10].mxu1 }
 0x246   : > { %2148 = vrcp.f32 %v988_v58  ;;  %v989_v63 = vadd.f32 1.0, %v2141_v60  ;;  %v871_v0 = vpop.f32.mrb[11].mxu1  ;;  %v870_v25 = vadd.f32 %v869_v62, %v2843_v47 }
 0x247   : > { %2150 = vtanh.f32 %v850_v56  ;;  %v1686_v1 = vmul.f32 -1.442695, %v868_v61  ;;  %v872_v2 = vadd.f32 %v871_v0, %v2835_v36 }
 0x248   : > { %2152 = vrcp.f32 %v989_v63 }
 0x249   : > { %2154 = vpow2.f32 %v1686_v1  ;;  %v1687_v4 = vmul.f32 -1.442695, %v872_v2 }
 0x24b   : > { %v2143_v5 = vpop.eup %2142  ;;  %2156 = vpow2.f32 %v1687_v4  ;;  %v875_v7 = vpop.f32.mrb[12].mxu1 }
 0x24c   : > { %v990_v8 = vadd.f32 1.0, %v2143_v5  ;;  %v877_v9 = vpop.f32.mrb[13].mxu1  ;;  %2158 = vtanh.f32 %v856_v3  ;;  %v876_v46 = vadd.f32 %v875_v7, %v2843_v47 }
 0x24d   : > { %v2145_v10 = vpop.eup %2144  ;;  %v878_v11 = vadd.f32 %v877_v9, %v2835_v36  ;;  %v879_v12 = vpop.f32.mrb[14].mxu1 }
 0x24e   : > { %2160 = vrcp.f32 %v990_v8  ;;  %v991_v13 = vadd.f32 1.0, %v2145_v10  ;;  %v881_v14 = vpop.f32.mrb[15].mxu1  ;;  %v2147_v15 = vpop.eup %2146  ;;  %v880_v52 = vadd.f32 %v879_v12, %v2843_v47 }
 0x24f   : > { %2162 = vtanh.f32 %v860_v6  ;;  %v1688_v16 = vmul.f32 -1.442695, %v878_v11  ;;  %v882_v17 = vadd.f32 %v881_v14, %v2835_v36 }
 0x250   : > { %v2149_v18 = vpop.eup %2148  ;;  %2164 = vrcp.f32 %v991_v13 }
 0x251   : > { %v2151_v19 = vpop.eup %2150  ;;  %2166 = vpow2.f32 %v1688_v16  ;;  %v1689_v21 = vmul.f32 -1.442695, %v882_v17  ;;  %v1037_v22 = vmul.f32 %v2149_v18, %v2147_v15 }
 0x252   : > { %v2153_v23 = vpop.eup %2152 }
 0x253   : > { %v2155_v24 = vpop.eup %2154  ;;  %2168 = vpow2.f32 %v1689_v21  ;;  %v885_v26 = vpop.f32.mrb[16].mxu1  ;;  %v1038_v27 = vmul.f32 %v2153_v23, %v2151_v19 }
 0x254   : > { %v992_v28 = vadd.f32 1.0, %v2155_v24  ;;  %v887_v29 = vpop.f32.mrb[17].mxu1  ;;  %2170 = vtanh.f32 %v866_v20  ;;  %v886_v4 = vadd.f32 %v885_v26, %v2843_v47 }
 0x255   : > { %v2157_v32 = vpop.eup %2156  ;;  %v888_v33 = vadd.f32 %v887_v29, %v2835_v36  ;;  %v889_v37 = vpop.f32.mrb[18].mxu1  ;;  %v1928_v38 = vpack.c.bf16 %v1038_v27, %v1037_v22 }
 0x256   : > { %2172 = vrcp.f32 %v992_v28  ;;  %v993_v34 = vadd.f32 1.0, %v2157_v32  ;;  %v891_v39 = vpop.f32.mrb[19].mxu1  ;;  %v2159_v40 = vpop.eup %2158  ;;  %v890_v9 = vadd.f32 %v889_v37, %v2843_v47 }
 0x257   : > { %2174 = vtanh.f32 %v870_v25  ;;  %v1690_v41 = vmul.f32 -1.442695, %v888_v33  ;;  %v892_v42 = vadd.f32 %v891_v39, %v2835_v36  ;;  %1929 = vmatpush3.bf16.xpose.msra.mxu0 %v1928_v38 }
 0x258   : > { %v2161_v44 = vpop.eup %2160  ;;  %2176 = vrcp.f32 %v993_v34  ;;  %1930 = vmatprep.subr.bf16.mxu0 %v2500_v35 }
 0x259   : > { %v2163_v45 = vpop.eup %2162  ;;  %2178 = vpow2.f32 %v1690_v41  ;;  %v1691_v48 = vmul.f32 -1.442695, %v892_v42  ;;  %v1039_v49 = vmul.f32 %v2161_v44, %v2159_v40 }
 0x25a   : > { %v2165_v50 = vpop.eup %2164 }
 0x25b   : > { %v2167_v51 = vpop.eup %2166  ;;  %2180 = vpow2.f32 %v1691_v48  ;;  %v895_v53 = vpop.f32.mrb[20].mxu1  ;;  %v1040_v54 = vmul.f32 %v2165_v50, %v2163_v45 }
 0x25c   : > { %v994_v55 = vadd.f32 1.0, %v2167_v51  ;;  %v897_v56 = vpop.f32.mrb[21].mxu1  ;;  %2182 = vtanh.f32 %v876_v46  ;;  %v896_v25 = vadd.f32 %v895_v53, %v2843_v47 }
 0x25d   : > { %v2169_v57 = vpop.eup %2168  ;;  %v898_v58 = vadd.f32 %v897_v56, %v2835_v36  ;;  %v899_v59 = vpop.f32.mrb[22].mxu1  ;;  %v1931_v60 = vpack.c.bf16 %v1040_v54, %v1039_v49 }
 0x25e   : > { %2184 = vrcp.f32 %v994_v55  ;;  %v995_v61 = vadd.f32 1.0, %v2169_v57  ;;  %v901_v62 = vpop.f32.mrb[23].mxu1  ;;  %v2171_v63 = vpop.eup %2170  ;;  %v900_v32 = vadd.f32 %v899_v59, %v2843_v47 }
 0x25f   : > { %2186 = vtanh.f32 %v880_v52  ;;  %v1692_v0 = vmul.f32 -1.442695, %v898_v58  ;;  %v902_v1 = vadd.f32 %v901_v62, %v2835_v36  ;;  %1932 = vmatpush3.bf16.xpose.msra.mxu0 %v1931_v60 }
 0x260   : > { %v2173_v2 = vpop.eup %2172  ;;  %2188 = vrcp.f32 %v995_v61  ;;  %1933 = vmatprep.subr.bf16.mxu0 %v2500_v35 }
 0x261   : > { %v2175_v3 = vpop.eup %2174  ;;  %2190 = vpow2.f32 %v1692_v0  ;;  %v1693_v5 = vmul.f32 -1.442695, %v902_v1  ;;  %v1041_v6 = vmul.f32 %v2173_v2, %v2171_v63 }
 0x262   : > { %v2177_v7 = vpop.eup %2176 }
 0x263   : > { %v2179_v8 = vpop.eup %2178  ;;  %2192 = vpow2.f32 %v1693_v5  ;;  %v905_v10 = vpop.f32.mrb[24].mxu1  ;;  %v1042_v11 = vmul.f32 %v2177_v7, %v2175_v3 }
 0x264   : > { %v996_v12 = vadd.f32 1.0, %v2179_v8  ;;  %v907_v13 = vpop.f32.mrb[25].mxu1  ;;  %2194 = vtanh.f32 %v886_v4  ;;  %v906_v52 = vadd.f32 %v905_v10, %v2843_v47 }
 0x265   : > { %v2181_v14 = vpop.eup %2180  ;;  %v908_v15 = vadd.f32 %v907_v13, %v2835_v36  ;;  %v909_v16 = vpop.f32.mrb[26].mxu1  ;;  %v1934_v17 = vpack.c.bf16 %v1042_v11, %v1041_v6 }
 0x266   : > { %2196 = vrcp.f32 %v996_v12  ;;  %v997_v18 = vadd.f32 1.0, %v2181_v14  ;;  %v911_v19 = vpop.f32.mrb[27].mxu1  ;;  %v2183_v20 = vpop.eup %2182  ;;  %v910_v57 = vadd.f32 %v909_v16, %v2843_v47 }
 0x267   : > { %2198 = vtanh.f32 %v890_v9  ;;  %v1694_v21 = vmul.f32 -1.442695, %v908_v15  ;;  %v912_v22 = vadd.f32 %v911_v19, %v2835_v36  ;;  %1935 = vmatpush3.bf16.xpose.msra.mxu0 %v1934_v17 }
 0x268   : > { %v2185_v23 = vpop.eup %2184  ;;  %2200 = vrcp.f32 %v997_v18  ;;  %1936 = vmatprep.subr.bf16.mxu0 %v2500_v35 }
 0x269   : > { %v2187_v24 = vpop.eup %2186  ;;  %2202 = vpow2.f32 %v1694_v21  ;;  %v1695_v26 = vmul.f32 -1.442695, %v912_v22  ;;  %v1043_v27 = vmul.f32 %v2185_v23, %v2183_v20 }
 0x26a   : > { %v2189_v28 = vpop.eup %2188 }
 0x26b   : > { %v2191_v29 = vpop.eup %2190  ;;  %2204 = vpow2.f32 %v1695_v26  ;;  %v915_v33 = vpop.f32.mrb[28].mxu1  ;;  %v1044_v37 = vmul.f32 %v2189_v28, %v2187_v24  ;;  %v1036_v24 = vld [vmem:[%s3092_s5] sm:$0x1]  ;;  %v1126_v26 = vstv %s1698_s17 }
 0x26c   : > { %v998_v38 = vadd.f32 1.0, %v2191_v29  ;;  %v917_v34 = vpop.f32.mrb[29].mxu1  ;;  %2206 = vtanh.f32 %v896_v25  ;;  %v916_v1 = vadd.f32 %v915_v33, %v2843_v47  ;;  %v2887_v25 = vand.u32 127, %v721_v30  ;;  %v1135_v33 = vld [vmem:[#allocation3] sm:$0x1] }
 0x26d   : > { %v2193_v39 = vpop.eup %2192  ;;  %v918_v40 = vadd.f32 %v917_v34, %v2835_v36  ;;  %v919_v41 = vpop.f32.mrb[30].mxu1  ;;  %v1937_v42 = vpack.c.bf16 %v1044_v37, %v1043_v27 }
 0x26e   : > { %2208 = vrcp.f32 %v998_v38  ;;  %v999_v44 = vadd.f32 1.0, %v2193_v39  ;;  %v921_v45 = vpop.f32.mrb[31].mxu1  ;;  %v2195_v46 = vpop.eup %2194  ;;  %v920_v5 = vadd.f32 %v919_v41, %v2843_v47  ;;  %v1127_v27 = vadd.s32 %v1126_v26, %v2887_v25 }
 0x26f   : > { %2210 = vtanh.f32 %v900_v32  ;;  %v1696_v48 = vmul.f32 -1.442695, %v918_v40  ;;  %v922_v49 = vadd.f32 %v921_v45, %v2835_v36  ;;  %1938 = vmatpush3.bf16.xpose.msra.mxu0 %v1937_v42  ;;  %vm1360_vm6 = vcmp.le.s32.totalorder (!%p1699_p6), %v2829_v31, %v2887_v25 }
 0x270   : > { %v2197_v50 = vpop.eup %2196  ;;  %2212 = vrcp.f32 %v999_v44  ;;  %1939 = vmatprep.subr.bf16.mxu0 %v2500_v35  ;;  %vm1128_vm2 = vcmp.lt.s32.totalorder %v1127_v27, 500 }
 0x271   : > { %v2199_v51 = vpop.eup %2198  ;;  %2214 = vpow2.f32 %v1696_v48  ;;  %v1697_v53 = vmul.f32 -1.442695, %v922_v49  ;;  %v1045_v54 = vmul.f32 %v2197_v50, %v2195_v46  ;;  %v1152_v48 = vld [vmem:[#allocation4] sm:$0x1] }
 0x272   : > { %v2201_v55 = vpop.eup %2200 }
 0x273   : > { %v2203_v56 = vpop.eup %2202  ;;  %2216 = vpow2.f32 %v1697_v53  ;;  %v1046_v58 = vmul.f32 %v2201_v55, %v2199_v51 }
 0x274   : > { %v1000_v59 = vadd.f32 1.0, %v2203_v56  ;;  %2218 = vtanh.f32 %v906_v52 }
 0x275   : > { %v2205_v60 = vpop.eup %2204  ;;  %v1940_v36 = vpack.c.bf16 %v1046_v58, %v1045_v54  ;;  %v1160_v54 = vld [vmem:[#allocation2] sm:$0x1] }
 0x276   : > { %2220 = vrcp.f32 %v1000_v59  ;;  %v1001_v61 = vadd.f32 1.0, %v2205_v60  ;;  %v2207_v62 = vpop.eup %2206  ;;  %v1262_v60 = vld [vmem:[%s3093_s6] sm:$0xff] (!%p1699_p6) }
 0x277   : > { %2222 = vtanh.f32 %v910_v57  ;;  %1941 = vmatpush3.bf16.xpose.msra.mxu0 %v1940_v36  ;;  %v1263_v36 = vld [vmem:[%s3093_s6 + $0x8] sm:$0xff] (!%p1699_p6) }
 0x278   : > { %v2209_v63 = vpop.eup %2208  ;;  %2224 = vrcp.f32 %v1001_v61  ;;  %1942 = vmatprep.subr.bf16.mxu0 %v2500_v35  ;;  %v2503_v61 = vmov (!%p1699_p6), 0  }
 0x279   : > { %v2211_v0 = vpop.eup %2210  ;;  %v1047_v2 = vmul.f32 %v2209_v63, %v2207_v62  ;;  %2226 = vtanh.f32 %v916_v1  ;;  %v2504_v62 = vmov (!%p1699_p6), 0.0|0.0   ;;  %v1976_v63 = vpack.c.bf16 (!%p1699_p6), %v1263_v36, %v1262_v60  ;;  %v1265_v1 = vld [vmem:[%s3093_s6 + $0x18] sm:$0xff] (!%p1699_p6) }
 0x27a   : > { %v2213_v3 = vpop.eup %2212 }
 0x27b   : > { %v2215_v4 = vpop.eup %2214  ;;  %v1048_v6 = vmul.f32 %v2213_v3, %v2211_v0  ;;  %v1264_v0 = vld [vmem:[%s3093_s6 + $0x10] sm:$0xff] (!%p1699_p6)  ;;  %v1266_v3 = vld [vmem:[%s3093_s6 + $0x20] sm:$0xff] (!%p1699_p6) }
 0x27c   : > { %v1002_v7 = vadd.f32 1.0, %v2215_v4  ;;  %v1267_v4 = vld [vmem:[%s3093_s6 + $0x28] sm:$0xff] (!%p1699_p6) }
 0x27d   : > { %v2217_v8 = vpop.eup %2216  ;;  %v1943_v9 = vpack.c.bf16 %v1048_v6, %v1047_v2  ;;  %v1979_v2 = vpack.c.bf16 (!%p1699_p6), %v1265_v1, %v1264_v0  ;;  %v1268_v6 = vld [vmem:[%s3093_s6 + $0x30] sm:$0xff] (!%p1699_p6) }
 0x27e   : > { %2228 = vrcp.f32 %v1002_v7  ;;  %v1003_v10 = vadd.f32 1.0, %v2217_v8  ;;  %v2219_v11 = vpop.eup %2218  ;;  %v1269_v7 = vld [vmem:[%s3093_s6 + $0x38] sm:$0xff] (!%p1699_p6) }
 0x27f   : > { %2230 = vtanh.f32 %v920_v5  ;;  %1944 = vmatpush3.bf16.xpose.msra.mxu0 %v1943_v9  ;;  %v1982_v5 = vpack.c.bf16 (!%p1699_p6), %v1267_v4, %v1266_v3  ;;  %v1985_v9 = vpack.c.bf16 (!%p1699_p6), %v1269_v7, %v1268_v6 }
 0x280   : > { %v2221_v12 = vpop.eup %2220  ;;  %2232 = vrcp.f32 %v1003_v10  ;;  %1945 = vmatprep.subr.bf16.mxu0 %v2500_v35  ;;  %v1270_v10 = vld [vmem:[%s3093_s6 + $0x40] sm:$0xff] (!%p1699_p6) }
 0x281   : > { %v2223_v13 = vpop.eup %2222  ;;  %v1049_v14 = vmul.f32 %v2221_v12, %v2219_v11  ;;  %v1271_v11 = vld [vmem:[%s3093_s6 + $0x48] sm:$0xff] (!%p1699_p6) }
 0x282   : > { %v2225_v15 = vpop.eup %2224  ;;  %v1988_v12 = vpack.c.bf16 (!%p1699_p6), %v1271_v11, %v1270_v10 }
 0x283   : > { %v1050_v16 = vmul.f32 %v2225_v15, %v2223_v13  ;;  %v2227_v17 = vpop.eup %2226  ;;  %v2506_v13 = vmov (!%p1699_p6), 0.0   ;;  %v1273_v15 = vld [vmem:[%s3093_s6 + $0x58] sm:$0xff] (!%p1699_p6) }
 0x284   : > { %1922 = vmatprep.subr.mxu1 (!%p1699_p6), %v2506_v13  ;;  %v1701_v27 = vsel (!%p1699_p6), %vm1360_vm6, 1.0, %v2506_v13 }
 0x285   : > { %v1946_v47 = vpack.c.bf16 %v1050_v16, %v1049_v14  ;;  %v1272_v14 = vld [vmem:[%s3093_s6 + $0x50] sm:$0xff] (!%p1699_p6) }
 0x286   : > { %v1991_v16 = vpack.c.bf16 (!%p1699_p6), %v1273_v15, %v1272_v14 }
 0x287   : > { %1947 = vmatpush3.bf16.xpose.msra.mxu0 %v1946_v47  ;;  %v1274_v47 = vld [vmem:[%s3093_s6 + $0x60] sm:$0xff] (!%p1699_p6) }
 0x288   : > { %v2229_v18 = vpop.eup %2228  ;;  %1948 = vmatprep.subr.bf16.mxu0 %v2500_v35 }
 0x289   : > { %v2231_v19 = vpop.eup %2230  ;;  %v1051_v20 = vmul.f32 %v2229_v18, %v2227_v17  ;;  %v1275_v17 = vld [vmem:[%s3093_s6 + $0x68] sm:$0xff] (!%p1699_p6) }
 0x28a   : > { %v2233_v21 = vpop.eup %2232  ;;  %v1994_v18 = vpack.c.bf16 (!%p1699_p6), %v1275_v17, %v1274_v47 }
 0x28b   : > { %v1052_v22 = vmul.f32 %v2233_v21, %v2231_v19  ;;  %v1276_v19 = vld [vmem:[%s3093_s6 + $0x70] sm:$0xff] (!%p1699_p6) }
 0x28d   : > { %v1949_v23 = vpack.c.bf16 %v1052_v22, %v1051_v20  ;;  %v1277_v20 = vld [vmem:[%s3093_s6 + $0x78] sm:$0xff] (!%p1699_p6) }
 0x28e   : > { %v1997_v21 = vpack.c.bf16 (!%p1699_p6), %v1277_v20, %v1276_v19 }
 0x28f   : > { %1950 = vmatpush3.bf16.xpose.msra.mxu0 %v1949_v23 }
 0x290   : > { %1975 = vmatprep.subr.bf16.mxu0 (!%p1699_p6), %v2504_v62 }
 0x296   : > { %1850 = vmatmul.mubr.f32.vlgmr.msra.gmra.mrb[16].mxu0 %v1036_v24 }
 0x297   : > { %1977 = vmatpush3.bf16.msra.mxu0 (!%p1699_p6), %v1976_v63  ;;  %1919 = vmatprep.mubr.msk.f32.mxu0 (!%p1699_p6), %vm2505_vm5, %v2506_v13 }
 0x298   : > { %1978 = vmatprep.subr.bf16.mxu0 (!%p1699_p6), %v2504_v62 }
 0x29b   : > { %1980 = vmatpush3.bf16.msra.mxu0 (!%p1699_p6), %v1979_v2 }
 0x29c   : > { %1981 = vmatprep.subr.bf16.mxu0 (!%p1699_p6), %v2504_v62 }
 0x29f   : > { %1983 = vmatpush3.bf16.msra.mxu0 (!%p1699_p6), %v1982_v5 }
 0x2a0   : > { %1984 = vmatprep.subr.bf16.mxu0 (!%p1699_p6), %v2504_v62 }
 0x2a3   : > { %1986 = vmatpush3.bf16.msra.mxu0 (!%p1699_p6), %v1985_v9 }
 0x2a4   : > { %1987 = vmatprep.subr.bf16.mxu0 (!%p1699_p6), %v2504_v62 }
 0x2a7   : > { %1989 = vmatpush3.bf16.msra.mxu0 (!%p1699_p6), %v1988_v12 }
 0x2a8   : > { %1990 = vmatprep.subr.bf16.mxu0 (!%p1699_p6), %v2504_v62 }
 0x2ab   : > { %1992 = vmatpush3.bf16.msra.mxu0 (!%p1699_p6), %v1991_v16 }
 0x2ac   : > { %1993 = vmatprep.subr.bf16.mxu0 (!%p1699_p6), %v2504_v62 }
 0x2af   : > { %1995 = vmatpush3.bf16.msra.mxu0 (!%p1699_p6), %v1994_v18 }
 0x2b0   : > { %1996 = vmatprep.subr.bf16.mxu0 (!%p1699_p6), %v2504_v62 }
 0x2b3   : > { %1998 = vmatpush3.bf16.msra.mxu0 (!%p1699_p6), %v1997_v21 }
 0x369   : > { %v1119_v35 = vpop.f32.mrb[16].mxu0 }
 0x36a   : > { %v1129_v28 = vsel %vm1128_vm2, %v1119_v35, -1e+30  ;;  %v1851_v29 = vpop.f32.mrb[17].mxu0  ;;  %v1278_v35 = vld [vmem:[%s3094_s7] sm:$0x1] (!%p1699_p6) }
 0x36b   : > { %1130 = vst [vmem:[%s428_s29] sm:$0x1] %v1129_v28  ;;  %v1132_v32 = vsel %vm1131_vm3, %v1129_v28, -inf }
 0x36c   : > { %1133 = vmax.xlane.f32.xlu0 %v1132_v32 }
 0x3f9   : > { %v1134_v37 = vpop.xlane.xlu0 %1133 }
 0x3fa   : > { %v1136_v38 = vmax.f32 %v1135_v33, %v1134_v37 }
 0x3fc   : > { %v1137_v34 = vsub.f32 %v1135_v33, %v1136_v38  ;;  %1243 = vst.msk [vmem:[#allocation3] sm:$0x1] %vm1158_vm4, %v1136_v38  ;;  %1142 = vperm.xlu0 %2096, %v1136_v38  }
 0x3fe   : > { %v1138_v45 = vmul.f32 1.442695, %v1137_v34 }
 0x400   : > { %2238 = vset.pattern.permute.xlu0 (!%p1699_p6), %v2503_v61 }
 0x47b   : > { %v1143_v30 = vpop.permute.xlu0 %1142 }
 0x47c   : > { %v1148_v39 = vrot.slane %v1143_v30, %v2840_v43 }
 0x47e   : > { %v1149_v40 = vsub.f32 %v1129_v28, %v1148_v39 }
 0x480   : > { %v1150_v41 = vmul.f32 1.442695, %v1149_v40 }
 0x482   : > { %2234 = vpow2.f32 %v1150_v41 }
 0x483   : > { %2236 = vpow2.f32 %v1138_v45 }
 0x48c   : > { %v2235_v42 = vpop.eup %2234 }
 0x48d   : > { %1885 = vmatmul.mubr.f32.vlgmr.msra.gmra.mrb[32].mxu1 %v2235_v42  ;;  %v1154_v44 = vsel %vm1131_vm3, %v2235_v42, 0.0  ;;  %v2237_v46 = vpop.eup %2236 }
 0x48e   : > { %1155 = vadd.xlane.f32.xlu1 %v1154_v44  ;;  %v1153_v49 = vmul.f32 %v2237_v46, %v1152_v48  ;;  %1924 = vmatprep.mubr.msk.f32.mxu1 (!%p1699_p6), %vm2505_vm5, %v2506_v13 }
 0x48f   : > { %1923 = vmatpush3.msk.msra.mxu1 (!%p1699_p6), %vm1386_vm7, %v1701_v27 }
 0x49f   : > { %1163 = vperm.xlu1 %2097, %v2237_v46  }
 0x51b   : > { %v1156_v50 = vpop.xlane.xlu1 %1155 }
 0x51c   : > { %v1157_v51 = vadd.f32 %v1156_v50, %v1153_v49 }
 0x51e   : > { %1159 = vst.msk [vmem:[#allocation4] sm:$0x1] %vm1158_vm4, %v1157_v51 }
 0x51f   : > { %v1164_v52 = vpop.permute.xlu1 %1163 }
 0x520   : > { %v1169_v53 = vrot.slane %v1164_v52, %v2840_v43 }
 0x522   : > { %v1170_v55 = vmul.f32 %v1169_v53, %v1160_v54 }
 0x525   : > { %v1248_v59 = vld [vmem:[#allocation4] sm:$0x1] (!%p1699_p6) }
 0x526   : > { %2239 = vrcp.f32 (!%p1699_p6), %v1248_v59 }
 0x530   : > { %v2240_v8 = vpop.eup (!%p1699_p6), %2239 }
 0x531   : > { %1253 = vperm.xlu0 (!%p1699_p6), %2238, %v2240_v8  }
 0x55d   : > { %1247 = sbr.rel (%p1699_p6) target bundleno = 1939 (0x793), region = 68 }
 0x560   : > { %v1237_v56 = vpop.f32.mrb[32].mxu1 }
 0x561   : > { %v1241_v57 = vadd.f32 %v1237_v56, %v1170_v55  ;;  %v1886_v58 = vpop.f32.mrb[33].mxu1 }
 0x563   : > { %1242 = vst [vmem:[#allocation2] sm:$0x1] %v1241_v57 }
 0x56a   : > { %v1250_v22 = vld [vmem:[#allocation2] sm:$0x1] }
 0x5b0   : > { %v1254_v23 = vpop.permute.xlu0 %1253 }
 0x5b1   : > { %v1259_v24 = vrot.slane %v1254_v23, %v2840_v43 }
 0x5b3   : > { %v1260_v26 = vmul.f32 %v1259_v24, %v1250_v22 }
 0x5b5   : > { %1261 = vst [vmem:[#allocation16] sm:$0x1] %v1260_v26  ;;  %1920 = vmatmul.mubr.f32.vlgmr.msra.gmra.mrb[0].mxu0 %v1260_v26 }
 0x688   : > { %v1345_v28 = vpop.f32.mrb[0].mxu0 }
 0x689   : > { %v1346_v29 = vadd.f32 %v1345_v28, %v1278_v35  ;;  %v1921_v32 = vpop.f32.mrb[1].mxu0 }
 0x68b   : > { %v1700_v33 = vmul.f32 -1.442695, %v1346_v29  ;;  %v1366_v37 = vand.u32 2147483647, %v1346_v29  ;;  %1350 = vst.msk [vmem:[#allocation14] sm:$0x1] %vm1349_vm8, %v1346_v29  ;;  %vm1364_vm10 = vcmp.ne.f32.partialorder %v1346_v29, %v1346_v29 }
 0x68c   : > { %v1363_v48 = vmax.f32 %v1346_v29, 0.0 }
 0x68d   : > { %2241 = vpow2.f32 %v1700_v33  ;;  %v1367_v43 = vsub.f32 0.0, %v1366_v37 }
 0x68f   : > { %v1368_v38 = vmul.f32 1.442695, %v1367_v43 }
 0x691   : > { %2243 = vpow2.f32 %v1368_v38 }
 0x697   : > { %v2242_v31 = vpop.eup %2241 }
 0x698   : > { %v1354_v25 = vadd.f32 1.0, %v2242_v31 }
 0x69a   : > { %2245 = vrcp.f32 %v1354_v25 }
 0x69b   : > { %v2244_v34 = vpop.eup %2243 }
 0x69c   : > { %v1370_v30 = vadd.f32 1.0, %v2244_v34  ;;  %v1373_v39 = vmul.f32 -0.5, %v2244_v34  ;;  %v1376_v42 = vand.u32 2147483647, %v2244_v34 }
 0x69e   : > { %2247 = vlog2.f32 %v1370_v30  ;;  %v1374_v41 = vadd.f32 1.0, %v1373_v39  ;;  %vm1377_vm9 = vcmp.lt.f32.partialorder %v1376_v42, 0.0004427343 }
 0x6a0   : > { %v1375_v46 = vmul.f32 %v2244_v34, %v1374_v41 }
 0x6a4   : > { %v2246_v40 = vpop.eup %2245 }
 0x6a5   : > { %1357 = vst.msk [vmem:[#allocation11] sm:$0x1] %vm1349_vm8, %v2246_v40 }
 0x6a8   : > { %v2248_v44 = vpop.eup %2247 }
 0x6a9   : > { %v1372_v45 = vmul.f32 0.6931472, %v2248_v44 }
 0x6ab   : > { %v1378_v49 = vsel %vm1377_vm9, %v1375_v46, %v1372_v45 }
 0x6ac   : > { %v1379_v50 = vadd.f32 %v1378_v49, %v1363_v48 }
 0x6ae   : > { %v1380_v51 = vsel %vm1364_vm10, %v1346_v29, %v1379_v50 }
 0x6af   : > { %v1381_v52 = vsub.f32 0.0, %v1380_v51 }
 0x6b1   : > { %1925 = vmatmul.mubr.msk.f32.vlgmr.msra.gmra.mrb[0].mxu1 %vm1382_vm11, %v1381_v52 }
 0x784   : > { %v1456_v53 = vpop.f32.mrb[0].mxu1 }
 0x785   : > { %v1460_v54 = vmul.f32 1.442695, %v1456_v53  ;;  %v1926_v55 = vpop.f32.mrb[1].mxu1 }
 0x787   : > { %2249 = vpow2.f32 %v1460_v54 }
 0x791   : > { %v2250_v56 = vpop.eup %2249 }
 0x792   : > { %1462 = vst.msk [vmem:[#allocation13] sm:$0x1] %vm1349_vm8, %v2250_v56 }
 0x793 PF: > { %s2507_s16 = smov [#allocation11]   ;;  %s2508_s12 = smov [#allocation14]  }
 0x794   : > { %s1487_s17 = sshll.u32 %s2507_s16, 4  ;;  %s1509_s15 = sshll.u32 %s2508_s12, 4  ;;  %s1488_s17 = int_to_ptr.vmem [resolvable:$true] %s1487_s17  ;;  %s2956_s15 = int_to_ptr.vmem [resolvable:$true] %s1509_s15 }
 0x795   : > { %s2309_s30 = scalar_lea.vmem %s1488_s17, 16  ;;  %p3128_p9 = scmp.eq.s32.totalorder %s2598_s25, 3 }
 0x796   : > { %p2310_p8 = scmp.ne.s32.totalorder %s1488_s17, %s2309_s30  ;;  %s2315_s18 = scalar_lea.vmem %s1488_s17, 32 }
 0x797   : > { %p2316_p7 = scmp.lt.s32.totalorder %s1488_s17, %s1488_s17  ;;  %p2317_p10 = scmp.lt.s32.totalorder %s2315_s18, %s2309_s30 }
 0x798   : > { %p2311_p13 = pnand %p2310_p8, %p3128_p9 }
 0x799   : > { %p2318_p1 = por %p2317_p10, %p2316_p7 }
 0x79a   : > { %p2312_p3 = pneg %p2311_p13 }
 0x79c   : > { %p2319_p0 = pnand %p2318_p1, %p2312_p3 }
 0x79e   : > { %2322 = shalt.err (!%p2319_p0)
}
 0x79f   : > { %s2323_s14 = scalar_lea.hbm %s3096_s9, 16  ;;  %p3129_p11 = pmov %p3128_p9 }
 0x7a0   : > { %p2324_p5 = scmp.ne.s32.totalorder %s3096_s9, %s2323_s14  ;;  %p2329_p6 = scmp.lt.u32.totalorder %s2323_s14, %s3096_s9 }
 0x7a2   : > { %p2325_p2 = pnand %p2324_p5, %p3129_p11 }
 0x7a4   : > { %p2326_p4 = pneg %p2325_p2 }
 0x7a6   : > { %p2331_p8 = pnand %p2329_p6, %p2326_p4 }
 0x7a8   : > { %2334 = shalt.err (!%p2331_p8)
}
 0x7a9   : > { %2007 = dma.vmem_to_hbm [thread:$0]  (%p3128_p9), %s1488_s17, 16, %s3096_s9, [#allocation12]  }
 0x7aa   : > { %s2335_s18 = scalar_lea.vmem %s2956_s15, 16  ;;  %p3130_p3 = pmov %p3128_p9 }
 0x7ab   : > { %p2336_p13 = scmp.ne.s32.totalorder %s2956_s15, %s2335_s18  ;;  %s2341_s13 = scalar_lea.vmem %s2956_s15, 32 }
 0x7ac   : > { %p2342_p1 = scmp.lt.s32.totalorder %s2956_s15, %s2956_s15  ;;  %p2343_p0 = scmp.lt.s32.totalorder %s2341_s13, %s2335_s18 }
 0x7ad   : > { %p2337_p7 = pnand %p2336_p13, %p3130_p3 }
 0x7ae   : > { %p2344_p5 = por %p2343_p0, %p2342_p1 }
 0x7af   : > { %p2338_p10 = pneg %p2337_p7 }
 0x7b1   : > { %p2345_p11 = pnand %p2344_p5, %p2338_p10 }
 0x7b3   : > { %2348 = shalt.err (!%p2345_p11)
}
 0x7b4   : > { %s2349_s27 = scalar_lea.hbm %s3098_s11, 16  ;;  %p3131_p4 = pmov %p3130_p3 }
 0x7b5   : > { %p2350_p2 = scmp.ne.s32.totalorder %s3098_s11, %s2349_s27  ;;  %p2355_p9 = scmp.lt.u32.totalorder %s2349_s27, %s3098_s11 }
 0x7b7   : > { %p2351_p6 = pnand %p2350_p2, %p3131_p4 }
 0x7b9   : > { %p2352_p8 = pneg %p2351_p6 }
 0x7bb   : > { %p2357_p13 = pnand %p2355_p9, %p2352_p8 }
 0x7bd   : > { %2360 = shalt.err (!%p2357_p13)
}
 0x7be   : > { %2011 = dma.vmem_to_hbm [thread:$0]  (%p3130_p3), %s2956_s15, 16, %s3098_s11, [#allocation15]  }
 0x7bf   : > { %s1704_s18 = sshll.u32 %s2598_s25, 4  ;;  %s1476_s27 = sshll.u32 %s428_s29, 4  ;;  %s1477_s27 = int_to_ptr.vmem [resolvable:$true] %s1476_s27 }
 0x7c0   : > { %s3004_s14 = scalar_lea.hbm %s3095_s8, %s1704_s18  ;;  %s1464_s21 = scalar_lea.sflag [#allocation7], %s2715_s26 }
 0x7c1   : > { %s2361_s28 = scalar_lea.vmem %s1477_s27, 16  ;;  %s2509_s17 = smov [#allocation10]  }
 0x7c2   : > { %p2362_p7 = scmp.ne.s32.totalorder %s1477_s27, %s2361_s28  ;;  %s2365_s16 = sshll.u32 %s2509_s17, 4  ;;  %s2366_s16 = int_to_ptr.vmem [resolvable:$false] %s2365_s16 }
 0x7c3   : > { %s2367_s12 = scalar_lea.vmem %s2366_s16, 32  ;;  %p2368_p0 = scmp.lt.s32.totalorder %s1477_s27, %s2366_s16 }
 0x7c4   : > { %p2363_p10 = pnand %p2362_p7, %p2664_p12  ;;  %p2369_p5 = scmp.lt.s32.totalorder %s2367_s12, %s2361_s28 }
 0x7c6   : > { %p2364_p1 = pneg %p2363_p10  ;;  %p2370_p11 = por %p2369_p5, %p2368_p0 }
 0x7c8   : > { %p2371_p2 = pnand %p2370_p11, %p2364_p1 }
 0x7ca   : > { %2374 = shalt.err (!%p2371_p2)
}
 0x7cb   : > { %s2375_s26 = scalar_lea.hbm %s3004_s14, 16  ;;  %s2379_s30 = scalar_lea.hbm %s3095_s8, 64 }
 0x7cc   : > { %p2376_p4 = scmp.ne.s32.totalorder %s3004_s14, %s2375_s26  ;;  %p2380_p9 = scmp.lt.u32.totalorder %s3004_s14, %s3095_s8 }
 0x7cd   : > { %p2381_p13 = scmp.lt.u32.totalorder %s2379_s30, %s2375_s26  ;;  %p2383_p7 = scmp.lt.u32.totalorder %s2375_s26, %s3004_s14 }
 0x7ce   : > { %p2377_p6 = pnand %p2376_p4, %p2664_p12 }
 0x7cf   : > { %p2382_p3 = por %p2381_p13, %p2380_p9 }
 0x7d0   : > { %p2378_p8 = pneg %p2377_p6 }
 0x7d1   : > { %p2384_p10 = por %p2383_p7, %p2382_p3 }
 0x7d3   : > { %p2385_p1 = pnand %p2384_p10, %p2378_p8 }
 0x7d5   : > { %2388 = shalt.err (!%p2385_p1)
}
 0x7d6   : > { %2005 = dma.vmem_to_hbm [thread:$0]  (%p2664_p12), %s1477_s27, 16, %s3004_s14, %s1464_s21  }
 0x7d7   : > { %s2510_s10 = smov [#allocation13]   ;;  %s2511_s17 = smov [#allocation16]  }
 0x7d8   : > { %s1498_s28 = sshll.u32 %s2510_s10, 4  ;;  %s1520_s16 = sshll.u32 %s2511_s17, 4  ;;  %s1499_s28 = int_to_ptr.vmem [resolvable:$true] %s1498_s28  ;;  %s1521_s16 = int_to_ptr.vmem [resolvable:$true] %s1520_s16 }
 0x7d9   : > { %s2389_s12 = scalar_lea.vmem %s1499_s28, 16  ;;  %p3132_p5 = scmp.eq.s32.totalorder %s2598_s25, 3 }
 0x7da   : > { %p2390_p0 = scmp.ne.s32.totalorder %s1499_s28, %s2389_s12  ;;  %s2395_s29 = scalar_lea.vmem %s1499_s28, 32 }
 0x7db   : > { %p2396_p4 = scmp.lt.s32.totalorder %s1499_s28, %s1499_s28  ;;  %p2397_p6 = scmp.lt.s32.totalorder %s2395_s29, %s2389_s12 }
 0x7dc   : > { %p2391_p11 = pnand %p2390_p0, %p3132_p5 }
 0x7dd   : > { %p2398_p8 = por %p2397_p6, %p2396_p4 }
 0x7de   : > { %p2392_p2 = pneg %p2391_p11 }
 0x7e0   : > { %p2399_p9 = pnand %p2398_p8, %p2392_p2 }
 0x7e2   : > { %2402 = shalt.err (!%p2399_p9)
}
 0x7e3   : > { %s3133_s15 = sld [smem:[#allocation25_spill]]  ;;  %p3134_p13 = pmov %p3132_p5 }
 0x7e9   : > { %s2403_s14 = scalar_lea.hbm %s3133_s15, 16 }
 0x7ea   : > { %p2404_p12 = scmp.ne.s32.totalorder %s3133_s15, %s2403_s14  ;;  %p2409_p10 = scmp.lt.u32.totalorder %s2403_s14, %s3133_s15 }
 0x7ec   : > { %p2405_p3 = pnand %p2404_p12, %p3134_p13 }
 0x7ee   : > { %p2406_p7 = pneg %p2405_p3 }
 0x7f0   : > { %p2411_p1 = pnand %p2409_p10, %p2406_p7 }
 0x7f2   : > { %2414 = shalt.err (!%p2411_p1)
}
 0x7f3   : > { %p3135_p0 = pmov %p3132_p5  ;;  %s2415_s17 = scalar_lea.vmem %s1521_s16, 16 }
 0x7f4   : > { %p2416_p5 = scmp.ne.s32.totalorder %s1521_s16, %s2415_s17  ;;  %s2421_s12 = scalar_lea.vmem %s1521_s16, 32 }
 0x7f5   : > { %2009 = dma.vmem_to_hbm [thread:$0]  (%p3135_p0), %s1499_s28, 16, %s3133_s15, [#allocation12]  }
 0x7f6   : > { %p3136_p11 = pmov %p3135_p0  ;;  %p2422_p6 = scmp.lt.s32.totalorder %s1521_s16, %s1521_s16 }
 0x7f7   : > { %p2423_p8 = scmp.lt.s32.totalorder %s2421_s12, %s2415_s17 }
 0x7f8   : > { %p2417_p2 = pnand %p2416_p5, %p3136_p11 }
 0x7f9   : > { %p2424_p9 = por %p2423_p8, %p2422_p6 }
 0x7fa   : > { %p2418_p4 = pneg %p2417_p2 }
 0x7fc   : > { %p2425_p12 = pnand %p2424_p9, %p2418_p4 }
 0x7fe   : > { %2428 = shalt.err (!%p2425_p12)
}
 0x7ff   : > { %s3137_s26 = sld [smem:[#allocation26_spill]]  ;;  %p3138_p3 = pmov %p3135_p0 }
 0x805   : > { %s2429_s14 = scalar_lea.hbm %s3137_s26, 16 }
 0x806   : > { %p2430_p13 = scmp.ne.s32.totalorder %s3137_s26, %s2429_s14  ;;  %p2435_p1 = scmp.lt.u32.totalorder %s2429_s14, %s3137_s26 }
 0x808   : > { %p2431_p7 = pnand %p2430_p13, %p3138_p3 }
 0x80a   : > { %p2432_p10 = pneg %p2431_p7 }
 0x80c   : > { %p2437_p0 = pnand %p2435_p1, %p2432_p10 }
 0x80e   : > { %2440 = shalt.err (!%p2437_p0)
}
 0x80f   : > { %p3139_p5 = pmov %p3138_p3  ;;  %p3140_p11 = pmov %p3138_p3 }
 0x811   : > { %2013 = dma.vmem_to_hbm [thread:$0]  (%p3139_p5), %s1521_s16, 16, %s3137_s26, [#allocation15]  }
 0x812   : > { %2466 = dma.done.wait (%p3140_p11), [#allocation12], 32   ;;  %p3141_p2 = pmov %p3138_p3 }
 0x814   : > { %2468 = vsyncadd (%p3141_p2), [#allocation12], 4294967264  ;;  %p3142_p4 = pmov %p3141_p2 }
 0x815   : > { %p3143_p6 = pmov %p3141_p2 }
 0x816   : > { %2470 = dma.done.wait (%p3142_p4), [#allocation15], 32  }
 0x817   : > { %2472 = vsyncadd (%p3143_p6), [#allocation15], 4294967264 }
 0x818 PF: > { %s3144_s10 = sld [smem:[#allocation22_spill]]  ;;  %s3145_s17 = sld [smem:[#allocation23_spill]] }
 0x819   : > { %p2046_p8 = scmp.ge.s32.totalorder %s2491_s24, 2 }
 0x81e   : > { %s1548_s12 = sand.u32 1, %s3144_s10   ;;  %p3146_p9 = scmp.ne.s32.totalorder %s3145_s17, 0 }
 0x81f   : > { %s1549_s16 = scalar_lea.sflag [#allocation7], %s1548_s12 }
 0x820   : > { %p2032_p12 = pnand %p2046_p8, %p3146_p9 }
 0x822   : > { %2474 = dma.done.wait (!%p2032_p12), %s1549_s16, 16  }
 0x823   : > { %2476 = vsyncadd (!%p2032_p12), %s1549_s16, 4294967280  ;;  %s3147_s24 = sld [smem:[#allocation24_spill]]  ;;  %s3148_s21 = smov %s2483_s22 }
 0x824   : > { %s3149_s22 = smov %s2487_s23  ;;  %s3150_s23 = smov %s2660_s19 }
 0x829   : > { %p29_p13 = scmp.ge.s32.totalorder %s3147_s24, 6  }
 0x82b   :  { %31 = sbr.rel (!%p29_p13) target bundleno = 11 (0xb), region = 141 }
 0x832   :  { %1553 = vsyncpa [#allocation6], 1 }
 0x833   :  { %1555 = vsyncpa [#allocation6 + $0x1], 1 }
 0x834   :  { %1556 = vsyncpa [#allocation9], 1 }
 0x835   :  { %1557 = vsyncpa [#allocation7], 1 }
 0x836   :  { %1559 = vsyncpa [#allocation7 + $0x1], 1 }
 0x837   :  { %1560 = vsyncpa [#allocation12], 1 }
 0x838   :  { %1561 = vsyncpa [#allocation15], 1 }

</bundles_post_ra>
